<compile_context>
chip_gen: v5e
topology: v5e:2x2
jax: 0.10.0
libtpu: 0.0.40
codegen_flags: <defaults>
</compile_context>

<pallas_src>
import functools

import jax
import jax.numpy as jnp
import numpy as np
from jax.experimental import pallas as pl
from jax.experimental.pallas import tpu as pltpu

BN_EPS = 1e-5
NEG_SLOPE = 0.2


def _leaky_relu(x):
    # slope in (0,1) => LeakyReLU(x) == max(x, slope*x); 2 VPU ops vs 3 for where().
    return jnp.maximum(x, NEG_SLOPE * x)


def _backbone(x_ref, w1_ref, b1_ref, w2_ref):
    """conv1(+bias)+LReLU -> conv2 (bias-free).  Returns h2 = (2*ndf, TP) f32."""
    x = x_ref[...].astype(jnp.bfloat16)                                  # (Cin, TP)
    h1 = jnp.dot(w1_ref[...], x, preferred_element_type=jnp.float32)    # (ndf, TP)
    h1 = _leaky_relu(h1 + b1_ref[...])
    h2 = jnp.dot(w2_ref[...], h1.astype(jnp.bfloat16),
                 preferred_element_type=jnp.float32)                    # (2*ndf, TP)
    return h2


def stats_kernel(x_ref, w1_ref, b1_ref, w2_ref, sum_ref, sq_ref):
    """Pass 1: per-batch-element partial sum / sum-of-squares of h2 per channel."""
    @pl.when(pl.program_id(1) == 0)
    def _():
        sum_ref[...] = jnp.zeros_like(sum_ref)
        sq_ref[...] = jnp.zeros_like(sq_ref)

    h2 = _backbone(x_ref, w1_ref, b1_ref, w2_ref)                       # (2*ndf, TP)
    # Lane-axis reductions -> natural (2*ndf, 1) column layout; tiny writeback.
    sum_ref[...] += jnp.sum(h2, axis=-1, keepdims=True)                 # (2*ndf, 1)
    sq_ref[...] += jnp.sum(h2 * h2, axis=-1, keepdims=True)


def apply_kernel(x_ref, w1_ref, b1_ref, w2_ref, scale_ref, shift_ref, w3_ref,
                 o_ref):
    """Pass 2: recompute h2, apply folded BN + LReLU + final 1x1 conv."""
    h2 = _backbone(x_ref, w1_ref, b1_ref, w2_ref)                       # (2*ndf, TP)
    h3 = _leaky_relu(h2 * scale_ref[...] + shift_ref[...])
    # (2*ndf -> 1) conv as VPU multiply + sublane reduce (avoids M=1 MXU matmul,
    # keeps the final layer in f32).  Output tile (1, TP) is lane-dense.
    o_ref[...] = jnp.sum(h3 * w3_ref[...], axis=0, keepdims=True)       # (1, TP)


def _choose_tile(hw, cap=4096):
    """Largest pixel tile <= cap that is a multiple of 128 and divides hw."""
    if hw <= cap:
        return hw
    if hw % 128 != 0:
        return hw  # TODO(synk): mask partial pixel tiles for non-128-aligned H*W.
    best, t = 128, 256
    while t <= cap:
        if hw % t == 0:
            best = t
        t += 128
    return best


def pixel_discriminator(x_nchw, params, tp_cap=4096):
    """x_nchw: (N, Cin, H, W) float32.  Returns (N, 1, H, W) float32."""
    w1, b1, w2, gamma, beta, w3 = params
    n, cin, hh, ww = x_nchw.shape
    hw = hh * ww
    c1 = w1.shape[0]            # ndf
    c2 = w2.shape[0]            # 2 * ndf

    x3 = x_nchw.reshape(n, cin, hw)          # free reshape, stays f32 in HBM
    tp = _choose_tile(hw, tp_cap)
    grid = (n, hw // tp)

    x_spec = pl.BlockSpec((None, cin, tp), lambda i, j: (i, 0, j))

    def const_spec(shape):
        # params: DMA'd once, VMEM-resident across all tiles.
        return pl.BlockSpec(shape, lambda i, j: (0,) * len(shape))

    # ---------------- pass 1: BatchNorm batch statistics ----------------
    sums, sqs = pl.pallas_call(
        stats_kernel,
        grid=grid,
        in_specs=[x_spec,
                  const_spec((c1, cin)),
                  const_spec((c1, 1)),
                  const_spec((c2, c1))],
        out_specs=(pl.BlockSpec((None, c2, 1), lambda i, j: (i, 0, 0)),
                   pl.BlockSpec((None, c2, 1), lambda i, j: (i, 0, 0))),
        out_shape=(jax.ShapeDtypeStruct((n, c2, 1), jnp.float32),
                   jax.ShapeDtypeStruct((n, c2, 1), jnp.float32)),
        compiler_params=pltpu.CompilerParams(
            dimension_semantics=("parallel", "arbitrary")),
    )(x3, w1, b1, w2)

    # Tiny cross-batch fold + BN affine fold in plain JAX (negligible cost).
    p_total = jnp.float32(n * hw)
    total_sum = jnp.sum(sums, axis=0)                    # (c2, 1)
    total_sq = jnp.sum(sqs, axis=0)                      # (c2, 1)
    mean = total_sum / p_total
    var = jnp.maximum(total_sq / p_total - mean * mean, 0.0)   # biased (train-mode) var
    inv_std = jax.lax.rsqrt(var + BN_EPS)
    scale = gamma * inv_std                              # folded BN affine
    shift = beta - mean * scale

    # ---------------- pass 2: apply network ----------------------------
    out3 = pl.pallas_call(
        apply_kernel,
        grid=grid,
        in_specs=[x_spec,
                  const_spec((c1, cin)),
                  const_spec((c1, 1)),
                  const_spec((c2, c1)),
                  const_spec((c2, 1)),
                  const_spec((c2, 1)),
                  const_spec((c2, 1))],
        out_specs=pl.BlockSpec((None, 1, tp), lambda i, j: (i, 0, j)),
        out_shape=jax.ShapeDtypeStruct((n, 1, hw), jnp.float32),
        compiler_params=pltpu.CompilerParams(
            dimension_semantics=("parallel", "parallel")),
    )(x3, w1, b1, w2, scale, shift, w3)

    return out3.reshape(n, 1, hh, ww)


def init_params(key, input_nc, ndf):
    """Deterministic synthetic parameters, stored channel-major for (Cout,Cin) @ (Cin,P)."""
    k1, k2, k3, k4, k5, k6 = jax.random.split(key, 6)
    w1 = (0.1 * jax.random.normal(k1, (ndf, input_nc), jnp.float32)).astype(jnp.bfloat16)
    b1 = 0.1 * jax.random.normal(k2, (ndf, 1), jnp.float32)
    w2 = (0.1 * jax.random.normal(k3, (2 * ndf, ndf), jnp.float32)).astype(jnp.bfloat16)
    gamma = 1.0 + 0.1 * jax.random.normal(k4, (2 * ndf, 1), jnp.float32)
    beta = 0.1 * jax.random.normal(k5, (2 * ndf, 1), jnp.float32)
    w3 = 0.1 * jax.random.normal(k6, (2 * ndf, 1), jnp.float32)
    return (w1, b1, w2, gamma, beta, w3)


def reference_forward(x_nchw, params):
    """Pure-JAX reference with identical precision policy (bf16 matmul in, f32 acc)."""
    w1, b1, w2, gamma, beta, w3 = params
    n, cin, hh, ww = x_nchw.shape
    xc = jnp.transpose(x_nchw, (1, 0, 2, 3)).reshape(cin, -1).astype(jnp.bfloat16)
    h1 = _leaky_relu(jnp.dot(w1, xc, preferred_element_type=jnp.float32) + b1)
    h2 = jnp.dot(w2, h1.astype(jnp.bfloat16), preferred_element_type=jnp.float32)
    mean = jnp.mean(h2, axis=1, keepdims=True)
    var = jnp.maximum(jnp.mean(h2 * h2, axis=1, keepdims=True) - mean * mean, 0.0)
    inv_std = jax.lax.rsqrt(var + BN_EPS)
    scale = gamma * inv_std
    shift = beta - mean * scale
    h3 = _leaky_relu(h2 * scale + shift)
    out = jnp.sum(h3 * w3, axis=0, keepdims=True)        # (1, P)
    return jnp.transpose(out.reshape(1, n, hh, ww), (1, 0, 2, 3))


if __name__ == "__main__":
    # Small shapes consistent with the module: batch=2, input_nc=4, 16x16, ndf=64.
    N, INPUT_NC, H, W = 2, 4, 16, 16
    NDF = 64

    key = jax.random.PRNGKey(0)
    kx, kp = jax.random.split(key)
    x = jax.random.normal(kx, (N, INPUT_NC, H, W), jnp.float32)
    params = init_params(kp, INPUT_NC, NDF)

    run = jax.jit(functools.partial(pixel_discriminator))
    out = jax.block_until_ready(run(x, params))
    assert out.shape == (N, 1, H, W), out.shape

    ref = jax.block_until_ready(reference_forward(x, params))
    np.testing.assert_allclose(np.asarray(out), np.asarray(ref),
                               rtol=2e-3, atol=2e-3)

    print("KERNEL_OK")
</pallas_src>

<mosaic_0001>
module attributes {stable_mosaic.version = 11 : i64} {
  func.func @stats_kernel(%arg0: i32, %arg1: i32, %arg2: memref<1x4x256xf32, #tpu.memory_space<vmem>>, %arg3: memref<64x4xbf16, #tpu.memory_space<vmem>>, %arg4: memref<64x1xf32, #tpu.memory_space<vmem>>, %arg5: memref<128x64xbf16, #tpu.memory_space<vmem>>, %arg6: memref<1x128x1xf32, #tpu.memory_space<vmem>>, %arg7: memref<1x128x1xf32, #tpu.memory_space<vmem>>) attributes {dimension_semantics = [#tpu.dimension_semantics<parallel>, #tpu.dimension_semantics<arbitrary>], iteration_bounds = array<i64: 2, 1>, scalar_prefetch = 0 : i64, scratch_operands = 0 : i64, tpu.core_type = #tpu.core_type<tc>, window_params = [{transform_indices = @transform_0, window_bounds = array<i64: 1, 4, 256>}, {pipeline_mode = #tpu.pipeline_mode<synchronous>, transform_indices = @transform_1, window_bounds = array<i64: 64, 4>}, {pipeline_mode = #tpu.pipeline_mode<synchronous>, transform_indices = @transform_2, window_bounds = array<i64: 64, 1>}, {pipeline_mode = #tpu.pipeline_mode<synchronous>, transform_indices = @transform_3, window_bounds = array<i64: 128, 64>}, {transform_indices = @transform_4, window_bounds = array<i64: 1, 128, 1>}, {transform_indices = @transform_5, window_bounds = array<i64: 1, 128, 1>}]} {
    %c0_i32 = arith.constant 0 : i32
    %0 = arith.cmpi eq, %arg1, %c0_i32 : i32
    %1 = arith.extui %0 : i1 to i32
    %c0_i32_0 = arith.constant 0 : i32
    %2 = arith.cmpi ne, %1, %c0_i32_0 : i32
    scf.if %2 {
      %cst_25 = arith.constant 0.000000e+00 : f32
      %34 = vector.broadcast %cst_25 : f32 to vector<128x1xf32>
      %c0_26 = arith.constant 0 : index
      %c0_27 = arith.constant 0 : index
      %c0_28 = arith.constant 0 : index
      %35 = vector.load %arg6[%c0_26, %c0_27, %c0_28] : memref<1x128x1xf32, #tpu.memory_space<vmem>>, vector<1x128x1xf32>
      %36 = vector.shape_cast %35 : vector<1x128x1xf32> to vector<128x1xf32>
      %37 = vector.shape_cast %34 : vector<128x1xf32> to vector<1x128x1xf32>
      tpu.vector_store %arg6[%c0_26, %c0_27, %c0_28], %37 {strides = array<i32>} : memref<1x128x1xf32, #tpu.memory_space<vmem>>, vector<1x128x1xf32>,
      %cst_29 = arith.constant 0.000000e+00 : f32
      %38 = vector.broadcast %cst_29 : f32 to vector<128x1xf32>
      %c0_30 = arith.constant 0 : index
      %c0_31 = arith.constant 0 : index
      %c0_32 = arith.constant 0 : index
      %39 = vector.load %arg7[%c0_30, %c0_31, %c0_32] : memref<1x128x1xf32, #tpu.memory_space<vmem>>, vector<1x128x1xf32>
      %40 = vector.shape_cast %39 : vector<1x128x1xf32> to vector<128x1xf32>
      %41 = vector.shape_cast %38 : vector<128x1xf32> to vector<1x128x1xf32>
      tpu.vector_store %arg7[%c0_30, %c0_31, %c0_32], %41 {strides = array<i32>} : memref<1x128x1xf32, #tpu.memory_space<vmem>>, vector<1x128x1xf32>,
    } else {
    }
    %c0 = arith.constant 0 : index
    %c0_1 = arith.constant 0 : index
    %c0_2 = arith.constant 0 : index
    %3 = vector.load %arg2[%c0, %c0_1, %c0_2] : memref<1x4x256xf32, #tpu.memory_space<vmem>>, vector<1x4x256xf32>
    %4 = vector.shape_cast %3 : vector<1x4x256xf32> to vector<4x256xf32>
    %5 = arith.truncf %4 : vector<4x256xf32> to vector<4x256xbf16>
    %c0_3 = arith.constant 0 : index
    %c0_4 = arith.constant 0 : index
    %6 = vector.load %arg3[%c0_3, %c0_4] : memref<64x4xbf16, #tpu.memory_space<vmem>>, vector<64x4xbf16>
    %cst = arith.constant dense<0.000000e+00> : vector<64x256xf32>
    %7 = tpu.matmul %6, %5, %cst {dimension_numbers = #tpu.dot_dimension_numbers<[1], [0], [0], [1], [0, 0, 1, 1], [], []>} : vector<64x4xbf16>, vector<4x256xbf16>, vector<64x256xf32> -> vector<64x256xf32>
    %c0_5 = arith.constant 0 : index
    %c0_6 = arith.constant 0 : index
    %8 = vector.load %arg4[%c0_5, %c0_6] : memref<64x1xf32, #tpu.memory_space<vmem>>, vector<64x1xf32>
    %9 = vector.broadcast %8 : vector<64x1xf32> to vector<64x256xf32>
    %10 = arith.addf %7, %9 : vector<64x256xf32>
    %cst_7 = arith.constant 2.000000e-01 : f32
    %11 = vector.broadcast %cst_7 : f32 to vector<64x256xf32>
    %12 = arith.mulf %11, %10 : vector<64x256xf32>
    %13 = arith.maximumf %10, %12 : vector<64x256xf32>
    %c0_8 = arith.constant 0 : index
    %c0_9 = arith.constant 0 : index
    %14 = vector.load %arg5[%c0_8, %c0_9] : memref<128x64xbf16, #tpu.memory_space<vmem>>, vector<128x64xbf16>
    %15 = arith.truncf %13 : vector<64x256xf32> to vector<64x256xbf16>
    %cst_10 = arith.constant dense<0.000000e+00> : vector<128x256xf32>
    %16 = tpu.matmul %14, %15, %cst_10 {dimension_numbers = #tpu.dot_dimension_numbers<[1], [0], [0], [1], [0, 0, 1, 1], [], []>} : vector<128x64xbf16>, vector<64x256xbf16>, vector<128x256xf32> -> vector<128x256xf32>
    %c0_11 = arith.constant 0 : index
    %c0_12 = arith.constant 0 : index
    %c0_13 = arith.constant 0 : index
    %17 = vector.load %arg6[%c0_11, %c0_12, %c0_13] : memref<1x128x1xf32, #tpu.memory_space<vmem>>, vector<1x128x1xf32>
    %18 = vector.shape_cast %17 : vector<1x128x1xf32> to vector<128x1xf32>
    %cst_14 = arith.constant dense<0.000000e+00> : vector<128xf32>
    %19 = vector.multi_reduction <add>, %16, %cst_14 [1] : vector<128x256xf32> to vector<128xf32>
    %20 = vector.shape_cast %19 : vector<128xf32> to vector<128x1xf32>
    %21 = arith.addf %18, %20 : vector<128x1xf32>
    %c0_15 = arith.constant 0 : index
    %c0_16 = arith.constant 0 : index
    %c0_17 = arith.constant 0 : index
    %22 = vector.load %arg6[%c0_15, %c0_16, %c0_17] : memref<1x128x1xf32, #tpu.memory_space<vmem>>, vector<1x128x1xf32>
    %23 = vector.shape_cast %22 : vector<1x128x1xf32> to vector<128x1xf32>
    %24 = vector.shape_cast %21 : vector<128x1xf32> to vector<1x128x1xf32>
    tpu.vector_store %arg6[%c0_15, %c0_16, %c0_17], %24 {strides = array<i32>} : memref<1x128x1xf32, #tpu.memory_space<vmem>>, vector<1x128x1xf32>,
    %c0_18 = arith.constant 0 : index
    %c0_19 = arith.constant 0 : index
    %c0_20 = arith.constant 0 : index
    %25 = vector.load %arg7[%c0_18, %c0_19, %c0_20] : memref<1x128x1xf32, #tpu.memory_space<vmem>>, vector<1x128x1xf32>
    %26 = vector.shape_cast %25 : vector<1x128x1xf32> to vector<128x1xf32>
    %27 = arith.mulf %16, %16 : vector<128x256xf32>
    %cst_21 = arith.constant dense<0.000000e+00> : vector<128xf32>
    %28 = vector.multi_reduction <add>, %27, %cst_21 [1] : vector<128x256xf32> to vector<128xf32>
    %29 = vector.shape_cast %28 : vector<128xf32> to vector<128x1xf32>
    %30 = arith.addf %26, %29 : vector<128x1xf32>
    %c0_22 = arith.constant 0 : index
    %c0_23 = arith.constant 0 : index
    %c0_24 = arith.constant 0 : index
    %31 = vector.load %arg7[%c0_22, %c0_23, %c0_24] : memref<1x128x1xf32, #tpu.memory_space<vmem>>, vector<1x128x1xf32>
    %32 = vector.shape_cast %31 : vector<1x128x1xf32> to vector<128x1xf32>
    %33 = vector.shape_cast %30 : vector<128x1xf32> to vector<1x128x1xf32>
    tpu.vector_store %arg7[%c0_22, %c0_23, %c0_24], %33 {strides = array<i32>} : memref<1x128x1xf32, #tpu.memory_space<vmem>>, vector<1x128x1xf32>,
    return
  }
  func.func @transform_0(%arg0: i32, %arg1: i32) -> (i32, i32, i32) {
    %c0_i32 = arith.constant 0 : i32
    %c0_i32_0 = arith.constant 0 : i32
    return %arg0, %c0_i32, %arg1 : i32, i32, i32
  }
  func.func @transform_1(%arg0: i32, %arg1: i32) -> (i32, i32) {
    %c0_i32 = arith.constant 0 : i32
    %c0_i32_0 = arith.constant 0 : i32
    %c0_i32_1 = arith.constant 0 : i32
    return %c0_i32, %c0_i32_0 : i32, i32
  }
  func.func @transform_2(%arg0: i32, %arg1: i32) -> (i32, i32) {
    %c0_i32 = arith.constant 0 : i32
    %c0_i32_0 = arith.constant 0 : i32
    %c0_i32_1 = arith.constant 0 : i32
    return %c0_i32, %c0_i32_0 : i32, i32
  }
  func.func @transform_3(%arg0: i32, %arg1: i32) -> (i32, i32) {
    %c0_i32 = arith.constant 0 : i32
    %c0_i32_0 = arith.constant 0 : i32
    %c0_i32_1 = arith.constant 0 : i32
    return %c0_i32, %c0_i32_0 : i32, i32
  }
  func.func @transform_4(%arg0: i32, %arg1: i32) -> (i32, i32, i32) {
    %c0_i32 = arith.constant 0 : i32
    %c0_i32_0 = arith.constant 0 : i32
    %c0_i32_1 = arith.constant 0 : i32
    return %arg0, %c0_i32, %c0_i32_0 : i32, i32, i32
  }
  func.func @transform_5(%arg0: i32, %arg1: i32) -> (i32, i32, i32) {
    %c0_i32 = arith.constant 0 : i32
    %c0_i32_0 = arith.constant 0 : i32
    %c0_i32_1 = arith.constant 0 : i32
    return %arg0, %c0_i32, %c0_i32_0 : i32, i32, i32
  }
}

module attributes {stable_mosaic.version = 11 : i64} {
  func.func @apply_kernel(%arg0: i32, %arg1: i32, %arg2: memref<1x4x256xf32, #tpu.memory_space<vmem>>, %arg3: memref<64x4xbf16, #tpu.memory_space<vmem>>, %arg4: memref<64x1xf32, #tpu.memory_space<vmem>>, %arg5: memref<128x64xbf16, #tpu.memory_space<vmem>>, %arg6: memref<128x1xf32, #tpu.memory_space<vmem>>, %arg7: memref<128x1xf32, #tpu.memory_space<vmem>>, %arg8: memref<128x1xf32, #tpu.memory_space<vmem>>, %arg9: memref<1x1x256xf32, #tpu.memory_space<vmem>>) attributes {dimension_semantics = [#tpu.dimension_semantics<parallel>, #tpu.dimension_semantics<parallel>], iteration_bounds = array<i64: 2, 1>, scalar_prefetch = 0 : i64, scratch_operands = 0 : i64, tpu.core_type = #tpu.core_type<tc>, window_params = [{transform_indices = @transform_0, window_bounds = array<i64: 1, 4, 256>}, {pipeline_mode = #tpu.pipeline_mode<synchronous>, transform_indices = @transform_1, window_bounds = array<i64: 64, 4>}, {pipeline_mode = #tpu.pipeline_mode<synchronous>, transform_indices = @transform_2, window_bounds = array<i64: 64, 1>}, {pipeline_mode = #tpu.pipeline_mode<synchronous>, transform_indices = @transform_3, window_bounds = array<i64: 128, 64>}, {pipeline_mode = #tpu.pipeline_mode<synchronous>, transform_indices = @transform_4, window_bounds = array<i64: 128, 1>}, {pipeline_mode = #tpu.pipeline_mode<synchronous>, transform_indices = @transform_5, window_bounds = array<i64: 128, 1>}, {pipeline_mode = #tpu.pipeline_mode<synchronous>, transform_indices = @transform_6, window_bounds = array<i64: 128, 1>}, {transform_indices = @transform_7, window_bounds = array<i64: 1, 1, 256>}]} {
    %c0 = arith.constant 0 : index
    %c0_0 = arith.constant 0 : index
    %c0_1 = arith.constant 0 : index
    %0 = vector.load %arg2[%c0, %c0_0, %c0_1] : memref<1x4x256xf32, #tpu.memory_space<vmem>>, vector<1x4x256xf32>
    %1 = vector.shape_cast %0 : vector<1x4x256xf32> to vector<4x256xf32>
    %2 = arith.truncf %1 : vector<4x256xf32> to vector<4x256xbf16>
    %c0_2 = arith.constant 0 : index
    %c0_3 = arith.constant 0 : index
    %3 = vector.load %arg3[%c0_2, %c0_3] : memref<64x4xbf16, #tpu.memory_space<vmem>>, vector<64x4xbf16>
    %cst = arith.constant dense<0.000000e+00> : vector<64x256xf32>
    %4 = tpu.matmul %3, %2, %cst {dimension_numbers = #tpu.dot_dimension_numbers<[1], [0], [0], [1], [0, 0, 1, 1], [], []>} : vector<64x4xbf16>, vector<4x256xbf16>, vector<64x256xf32> -> vector<64x256xf32>
    %c0_4 = arith.constant 0 : index
    %c0_5 = arith.constant 0 : index
    %5 = vector.load %arg4[%c0_4, %c0_5] : memref<64x1xf32, #tpu.memory_space<vmem>>, vector<64x1xf32>
    %6 = vector.broadcast %5 : vector<64x1xf32> to vector<64x256xf32>
    %7 = arith.addf %4, %6 : vector<64x256xf32>
    %cst_6 = arith.constant 2.000000e-01 : f32
    %8 = vector.broadcast %cst_6 : f32 to vector<64x256xf32>
    %9 = arith.mulf %8, %7 : vector<64x256xf32>
    %10 = arith.maximumf %7, %9 : vector<64x256xf32>
    %c0_7 = arith.constant 0 : index
    %c0_8 = arith.constant 0 : index
    %11 = vector.load %arg5[%c0_7, %c0_8] : memref<128x64xbf16, #tpu.memory_space<vmem>>, vector<128x64xbf16>
    %12 = arith.truncf %10 : vector<64x256xf32> to vector<64x256xbf16>
    %cst_9 = arith.constant dense<0.000000e+00> : vector<128x256xf32>
    %13 = tpu.matmul %11, %12, %cst_9 {dimension_numbers = #tpu.dot_dimension_numbers<[1], [0], [0], [1], [0, 0, 1, 1], [], []>} : vector<128x64xbf16>, vector<64x256xbf16>, vector<128x256xf32> -> vector<128x256xf32>
    %c0_10 = arith.constant 0 : index
    %c0_11 = arith.constant 0 : index
    %14 = vector.load %arg6[%c0_10, %c0_11] : memref<128x1xf32, #tpu.memory_space<vmem>>, vector<128x1xf32>
    %15 = vector.broadcast %14 : vector<128x1xf32> to vector<128x256xf32>
    %16 = arith.mulf %13, %15 : vector<128x256xf32>
    %c0_12 = arith.constant 0 : index
    %c0_13 = arith.constant 0 : index
    %17 = vector.load %arg7[%c0_12, %c0_13] : memref<128x1xf32, #tpu.memory_space<vmem>>, vector<128x1xf32>
    %18 = vector.broadcast %17 : vector<128x1xf32> to vector<128x256xf32>
    %19 = arith.addf %16, %18 : vector<128x256xf32>
    %cst_14 = arith.constant 2.000000e-01 : f32
    %20 = vector.broadcast %cst_14 : f32 to vector<128x256xf32>
    %21 = arith.mulf %20, %19 : vector<128x256xf32>
    %22 = arith.maximumf %19, %21 : vector<128x256xf32>
    %c0_15 = arith.constant 0 : index
    %c0_16 = arith.constant 0 : index
    %23 = vector.load %arg8[%c0_15, %c0_16] : memref<128x1xf32, #tpu.memory_space<vmem>>, vector<128x1xf32>
    %24 = vector.broadcast %23 : vector<128x1xf32> to vector<128x256xf32>
    %25 = arith.mulf %22, %24 : vector<128x256xf32>
    %cst_17 = arith.constant dense<0.000000e+00> : vector<256xf32>
    %26 = vector.multi_reduction <add>, %25, %cst_17 [0] : vector<128x256xf32> to vector<256xf32>
    %27 = vector.shape_cast %26 : vector<256xf32> to vector<1x256xf32>
    %c0_18 = arith.constant 0 : index
    %c0_19 = arith.constant 0 : index
    %c0_20 = arith.constant 0 : index
    %28 = vector.load %arg9[%c0_18, %c0_19, %c0_20] : memref<1x1x256xf32, #tpu.memory_space<vmem>>, vector<1x1x256xf32>
    %29 = vector.shape_cast %28 : vector<1x1x256xf32> to vector<1x256xf32>
    %30 = vector.shape_cast %27 : vector<1x256xf32> to vector<1x1x256xf32>
    tpu.vector_store %arg9[%c0_18, %c0_19, %c0_20], %30 {strides = array<i32>} : memref<1x1x256xf32, #tpu.memory_space<vmem>>, vector<1x1x256xf32>,
    return
  }
  func.func @transform_0(%arg0: i32, %arg1: i32) -> (i32, i32, i32) {
    %c0_i32 = arith.constant 0 : i32
    %c0_i32_0 = arith.constant 0 : i32
    return %arg0, %c0_i32, %arg1 : i32, i32, i32
  }
  func.func @transform_1(%arg0: i32, %arg1: i32) -> (i32, i32) {
    %c0_i32 = arith.constant 0 : i32
    %c0_i32_0 = arith.constant 0 : i32
    %c0_i32_1 = arith.constant 0 : i32
    return %c0_i32, %c0_i32_0 : i32, i32
  }
  func.func @transform_2(%arg0: i32, %arg1: i32) -> (i32, i32) {
    %c0_i32 = arith.constant 0 : i32
    %c0_i32_0 = arith.constant 0 : i32
    %c0_i32_1 = arith.constant 0 : i32
    return %c0_i32, %c0_i32_0 : i32, i32
  }
  func.func @transform_3(%arg0: i32, %arg1: i32) -> (i32, i32) {
    %c0_i32 = arith.constant 0 : i32
    %c0_i32_0 = arith.constant 0 : i32
    %c0_i32_1 = arith.constant 0 : i32
    return %c0_i32, %c0_i32_0 : i32, i32
  }
  func.func @transform_4(%arg0: i32, %arg1: i32) -> (i32, i32) {
    %c0_i32 = arith.constant 0 : i32
    %c0_i32_0 = arith.constant 0 : i32
    %c0_i32_1 = arith.constant 0 : i32
    return %c0_i32, %c0_i32_0 : i32, i32
  }
  func.func @transform_5(%arg0: i32, %arg1: i32) -> (i32, i32) {
    %c0_i32 = arith.constant 0 : i32
    %c0_i32_0 = arith.constant 0 : i32
    %c0_i32_1 = arith.constant 0 : i32
    return %c0_i32, %c0_i32_0 : i32, i32
  }
  func.func @transform_6(%arg0: i32, %arg1: i32) -> (i32, i32) {
    %c0_i32 = arith.constant 0 : i32
    %c0_i32_0 = arith.constant 0 : i32
    %c0_i32_1 = arith.constant 0 : i32
    return %c0_i32, %c0_i32_0 : i32, i32
  }
  func.func @transform_7(%arg0: i32, %arg1: i32) -> (i32, i32, i32) {
    %c0_i32 = arith.constant 0 : i32
    %c0_i32_0 = arith.constant 0 : i32
    return %arg0, %c0_i32, %arg1 : i32, i32, i32
  }
}

</mosaic_0001>

<bundles_post_ra>
// kernel: pixel_discriminator.3
= control target key start
LH: loop header
LB: loop body
LE: loop exit
PB: predicated region body
PF: predicated region fallthrough
CT: control target
= control target key end

     0   :  { %s1477_s24 = smov 0   ;;  %s1479_s25 = smov 0   ;;  %s1868_s0 = inlined_call_operand.vmem [shape: f32[2,4,256], index: 0, kind: input, shape index: {}]   ;;  %s1869_s1 = inlined_call_operand.vmem [shape: bf16[64,4], index: 1, kind: input, shape index: {}]   ;;  %s1870_s2 = inlined_call_operand.vmem [shape: f32[64,1], index: 2, kind: input, shape index: {}]   ;;  %s1871_s3 = inlined_call_operand.vmem [shape: bf16[128,64], index: 3, kind: input, shape index: {}]   ;;  %s1872_s4 = inlined_call_operand.vmem [shape: f32[128,1], index: 4, kind: input, shape index: {}]   ;;  %s1873_s5 = inlined_call_operand.vmem [shape: f32[128,1], index: 5, kind: input, shape index: {}]   ;;  %s1874_s6 = inlined_call_operand.vmem [shape: f32[128,1], index: 6, kind: input, shape index: {}]   ;;  %s1875_s7 = inlined_call_operand.vmem [shape: f32[2,1,256], index: 7, kind: output, shape index: {}]  }
   0x1   :  { %s1481_s26 = smov 0  }
   0x2 LB: > { %s29_s27 = sadd.s32 1, %s1430_s25  ;;  %p1285_p0 = scmp.ge.s32.totalorder %s1434_s26, 1  ;;  %s1434_s26 = sphi %s1481_s26, %s17_s26   ;;  %s1430_s25 = sphi %s1479_s25, %s1892_s25   ;;  %s1426_s24 = sphi %s1477_s24, %s1891_s24  }
   0x3   : > { %p31_p1 = scmp.ge.s32.totalorder %s29_s27, 2  ;;  %p258_p2 = scmp.lt.s32.totalorder %s1434_s26, 3 }
   0x5   : > { %s1894_s27 = smov (%p31_p1, %s29_s27), 0  ;;  %p259_p3 = pnand %p1285_p0, %p258_p2 }
   0x7   : > { %262 = sbr.rel (%p259_p3) target bundleno = 486 (0x1e6), region = 48 }
   0xc   : > { %v338_v0 = vld [vmem:[%s1870_s2 + $0x20] sm:$0xff]  ;;  %v336_v1 = vld [vmem:[%s1870_s2 + $0x10] sm:$0xff]  ;;  %p298_p4 = scmp.lt.s32.totalorder %s1426_s24, 1  ;;  %v1436_v3 = vmov 0   ;;  %v337_v6 = vld [vmem:[%s1870_s2 + $0x18] sm:$0xff]  ;;  %vm415_vm0 = vcmask 1041408  }
   0xd   : > { %v334_v2 = vld [vmem:[%s1870_s2] sm:$0xff]  ;;  %1411 = vset.pattern.permute.xlu2 %v1436_v3  ;;  %1410 = vset.pattern.permute.xlu1 %v1436_v3  ;;  %v340_v5 = vld [vmem:[%s1870_s2 + $0x30] sm:$0xff]  ;;  %v335_v7 = vld [vmem:[%s1870_s2 + $0x8] sm:$0xff]  ;;  %vm402_vm1 = vcmask 31744   ;;  %vm576_vm2 = vcmask 523264   ;;  %vm1192_vm3 = vcmask 1040384  }
   0xe   : > { %1409 = vset.pattern.permute.xlu0 %v1436_v3  ;;  %364 = vperm.xlu2 %1411, %v338_v0   ;;  %s1896_s24 = smov (!%p298_p4, %s1426_s24), 1  ;;  %v699_v10 = vld [vmem:[%s1872_s4] sm:$0xff]  ;;  %v339_v13 = vld [vmem:[%s1870_s2 + $0x28] sm:$0xff]  ;;  %v341_v14 = vld [vmem:[%s1870_s2 + $0x38] sm:$0xff] }
   0xf   : > { %354 = vperm.xlu1 %1410, %v336_v1   ;;  %344 = vperm.xlu0 %1409, %v334_v2   ;;  %s1363_s11 = sshll.u32 %s1896_s24, 3  ;;  %v1364_v17 = vld [vmem:[%s1869_s1] sm:$0xff]  ;;  %v702_v18 = vld [vmem:[%s1872_s4 + $0x18] sm:$0xff]  ;;  %v701_v19 = vld [vmem:[%s1872_s4 + $0x10] sm:$0xff]  ;;  %s1288_s12 = sshll.u32 %s1896_s24, 1 }
  0x10   : > { %s305_s14 = scalar_lea.vmem %s1868_s0, %s1363_s11  ;;  %v700_v20 = vld [vmem:[%s1872_s4 + $0x8] sm:$0xff]  ;;  %v705_v21 = vld [vmem:[%s1872_s4 + $0x30] sm:$0xff]  ;;  %v703_v23 = vld [vmem:[%s1872_s4 + $0x20] sm:$0xff]  ;;  %s314_s15 = scalar_lea.vmem %s1875_s7, %s1288_s12 }
  0x11   : > { %v317_v4 = vld [vmem:[%s305_s14] sm:$0xff]  ;;  %v704_v22 = vld [vmem:[%s1872_s4 + $0x28] sm:$0xff]  ;;  %v706_v27 = vld [vmem:[%s1872_s4 + $0x38] sm:$0xff] }
  0x12   : > { %319 = vst [vmem:[#allocation1] ss:$2 sm:$0xff] %v317_v4  ;;  %v1365_v24 = vld [vmem:[%s1869_s1 + $0x8] sm:$0xff]  ;;  %v707_v26 = vld [vmem:[%s1872_s4 + $0x40] sm:$0xff]  ;;  %v710_v29 = vld [vmem:[%s1872_s4 + $0x58] sm:$0xff] }
  0x13   : > { %v708_v25 = vld [vmem:[%s1872_s4 + $0x48] sm:$0xff]  ;;  %v711_v28 = vld [vmem:[%s1872_s4 + $0x60] sm:$0xff]  ;;  %v709_v30 = vld [vmem:[%s1872_s4 + $0x50] sm:$0xff] }
  0x14   : > { %v1366_v31 = vld [vmem:[%s1869_s1 + $0x10] sm:$0xff]  ;;  %v714_v32 = vld [vmem:[%s1872_s4 + $0x78] sm:$0xff]  ;;  %v712_v34 = vld [vmem:[%s1872_s4 + $0x68] sm:$0xff] }
  0x15   : > { %v713_v33 = vld [vmem:[%s1872_s4 + $0x70] sm:$0xff]  ;;  %v828_v36 = vld [vmem:[%s1873_s5 + $0x8] sm:$0xff]  ;;  %v827_v37 = vld [vmem:[%s1873_s5] sm:$0xff] }
  0x16   : > { %374 = vperm.xlu2 %1411, %v340_v5   ;;  %v829_v35 = vld [vmem:[%s1873_s5 + $0x10] sm:$0xff]  ;;  %v1367_v38 = vld [vmem:[%s1869_s1 + $0x18] sm:$0xff]  ;;  %v832_v39 = vld [vmem:[%s1873_s5 + $0x28] sm:$0xff] }
  0x17   : > { %359 = vperm.xlu1 %1410, %v337_v6   ;;  %349 = vperm.xlu0 %1409, %v335_v7   ;;  %v831_v40 = vld [vmem:[%s1873_s5 + $0x20] sm:$0xff]  ;;  %v830_v41 = vld [vmem:[%s1873_s5 + $0x18] sm:$0xff]  ;;  %v833_v44 = vld [vmem:[%s1873_s5 + $0x30] sm:$0xff] }
  0x18   : > { %v835_v42 = vld [vmem:[%s1873_s5 + $0x40] sm:$0xff]  ;;  %v834_v43 = vld [vmem:[%s1873_s5 + $0x38] sm:$0xff]  ;;  %v837_v46 = vld [vmem:[%s1873_s5 + $0x50] sm:$0xff] }
  0x19   : > { %v320_v8 = vld.sshfl [vmem:[#allocation1] sm:$0xff pattern:$0x75316420]  ;;  %v321_v9 = vld.sshfl [vmem:[#allocation1 + $0x8] sm:$0xff pattern:$0x75316420] }
  0x1a   : > { %v324_v11 = vpack.c.bf16 %v320_v8, %v320_v8  ;;  %v325_v12 = vpack.c.bf16 %v321_v9, %v321_v9  ;;  %v838_v45 = vld [vmem:[%s1873_s5 + $0x58] sm:$0xff]  ;;  %v836_v47 = vld [vmem:[%s1873_s5 + $0x48] sm:$0xff]  ;;  %v841_v48 = vld [vmem:[%s1873_s5 + $0x70] sm:$0xff] }
  0x1b   : > { %v840_v49 = vld [vmem:[%s1873_s5 + $0x68] sm:$0xff]  ;;  %v839_v50 = vld [vmem:[%s1873_s5 + $0x60] sm:$0xff]  ;;  %v842_v53 = vld [vmem:[%s1873_s5 + $0x78] sm:$0xff] }
  0x1c   : > { %v417_v15 = vsel %vm415_vm0, %v324_v11, 0  ;;  %v420_v16 = vsel %vm415_vm0, %v325_v12, 0  ;;  %v1020_v51 = vld [vmem:[%s1874_s6 + $0x8] sm:$0xff]  ;;  %v1019_v52 = vld [vmem:[%s1874_s6] sm:$0xff]  ;;  %v1022_v55 = vld [vmem:[%s1874_s6 + $0x18] sm:$0xff] }
  0x1d   : > { %429 = vmatpush.bf16.msra.mxu0 %v417_v15  ;;  %458 = vmatpush.bf16.msra.mxu1 %v420_v16  ;;  %v1023_v54 = vld [vmem:[%s1874_s6 + $0x20] sm:$0xff]  ;;  %v1021_v56 = vld [vmem:[%s1874_s6 + $0x10] sm:$0xff]  ;;  %v1026_v57 = vld [vmem:[%s1874_s6 + $0x38] sm:$0xff] }
  0x1e   : > { %717 = vperm.xlu2 %1411, %v699_v10   ;;  %v1025_v58 = vld [vmem:[%s1874_s6 + $0x30] sm:$0xff]  ;;  %v1024_v59 = vld [vmem:[%s1874_s6 + $0x28] sm:$0xff]  ;;  %v1027_v62 = vld [vmem:[%s1874_s6 + $0x40] sm:$0xff] }
  0x1f   : > { %369 = vperm.xlu1 %1410, %v339_v13   ;;  %379 = vperm.xlu0 %1409, %v341_v14   ;;  %v1029_v60 = vld [vmem:[%s1874_s6 + $0x50] sm:$0xff]  ;;  %v1028_v61 = vld [vmem:[%s1874_s6 + $0x48] sm:$0xff]  ;;  %v1031_v0 = vld [vmem:[%s1874_s6 + $0x60] sm:$0xff] }
  0x20   : > { %1305 = vmatmul.msk.bf16.vlgmr.msra.gmra.mxu0 %vm402_vm1, %v1364_v17  ;;  %1309 = vmatmul.msk.bf16.vlgmr.msra.gmra.mxu1 %vm402_vm1, %v1364_v17  ;;  %v1032_v63 = vld [vmem:[%s1874_s6 + $0x68] sm:$0xff]  ;;  %v1030_v1 = vld [vmem:[%s1874_s6 + $0x58] sm:$0xff]  ;;  %v1033_v3 = vld [vmem:[%s1874_s6 + $0x70] sm:$0xff] }
  0x21   : > { %v1034_v2 = vld [vmem:[%s1874_s6 + $0x78] sm:$0xff] }
  0x26   : > { %732 = vperm.xlu2 %1411, %v702_v18  }
  0x27   : > { %727 = vperm.xlu1 %1410, %v701_v19   ;;  %722 = vperm.xlu0 %1409, %v700_v20  }
  0x2e   : > { %747 = vperm.xlu2 %1411, %v705_v21  }
  0x2f   : > { %742 = vperm.xlu1 %1410, %v704_v22   ;;  %737 = vperm.xlu0 %1409, %v703_v23  }
  0x30   : > { %1306 = vmatmul.msk.bf16.gmra.mxu0 %vm402_vm1, %v1365_v24  ;;  %1310 = vmatmul.msk.bf16.gmra.mxu1 %vm402_vm1, %v1365_v24 }
  0x36   : > { %762 = vperm.xlu2 %1411, %v708_v25  }
  0x37   : > { %757 = vperm.xlu1 %1410, %v707_v26   ;;  %752 = vperm.xlu0 %1409, %v706_v27  }
  0x3e   : > { %777 = vperm.xlu2 %1411, %v711_v28  }
  0x3f   : > { %772 = vperm.xlu1 %1410, %v710_v29   ;;  %767 = vperm.xlu0 %1409, %v709_v30  }
  0x40   : > { %1307 = vmatmul.msk.bf16.gmra.mxu0 %vm402_vm1, %v1366_v31  ;;  %1311 = vmatmul.msk.bf16.gmra.mxu1 %vm402_vm1, %v1366_v31 }
  0x46   : > { %792 = vperm.xlu2 %1411, %v714_v32  }
  0x47   : > { %787 = vperm.xlu1 %1410, %v713_v33   ;;  %782 = vperm.xlu0 %1409, %v712_v34  }
  0x4e   : > { %855 = vperm.xlu2 %1411, %v829_v35  }
  0x4f   : > { %850 = vperm.xlu1 %1410, %v828_v36   ;;  %845 = vperm.xlu0 %1409, %v827_v37  }
  0x50   : > { %1308 = vmatmul.msk.bf16.gmra.mxu0 %vm402_vm1, %v1367_v38  ;;  %1312 = vmatmul.msk.bf16.gmra.mxu1 %vm402_vm1, %v1367_v38 }
  0x56   : > { %870 = vperm.xlu2 %1411, %v832_v39  }
  0x57   : > { %865 = vperm.xlu1 %1410, %v831_v40   ;;  %860 = vperm.xlu0 %1409, %v830_v41  }
  0x5e   : > { %885 = vperm.xlu2 %1411, %v835_v42  }
  0x5f   : > { %880 = vperm.xlu1 %1410, %v834_v43   ;;  %875 = vperm.xlu0 %1409, %v833_v44  }
  0x66   : > { %900 = vperm.xlu2 %1411, %v838_v45  }
  0x67   : > { %895 = vperm.xlu1 %1410, %v837_v46   ;;  %890 = vperm.xlu0 %1409, %v836_v47  }
  0x68   : > { %v365_v17 = vpop.permute.xlu2 %364 }
  0x6e   : > { %915 = vperm.xlu2 %1411, %v841_v48  }
  0x6f   : > { %910 = vperm.xlu1 %1410, %v840_v49   ;;  %905 = vperm.xlu0 %1409, %v839_v50  }
  0x70   : > { %v375_v23 = vpop.permute.xlu2 %374 }
  0x76   : > { %1042 = vperm.xlu2 %1411, %v1020_v51  }
  0x77   : > { %1037 = vperm.xlu1 %1410, %v1019_v52   ;;  %920 = vperm.xlu0 %1409, %v842_v53  }
  0x7e   : > { %1057 = vperm.xlu2 %1411, %v1023_v54  }
  0x7f   : > { %1052 = vperm.xlu1 %1410, %v1022_v55   ;;  %1047 = vperm.xlu0 %1409, %v1021_v56  }
  0x81   : > { %v355_v13 = vpop.permute.xlu1 %354  ;;  %v345_v15 = vpop.permute.xlu0 %344 }
  0x86   : > { %1072 = vperm.xlu2 %1411, %v1026_v57  }
  0x87   : > { %1067 = vperm.xlu1 %1410, %v1025_v58   ;;  %1062 = vperm.xlu0 %1409, %v1024_v59  }
  0x89   : > { %v360_v19 = vpop.permute.xlu1 %359  ;;  %v350_v20 = vpop.permute.xlu0 %349 }
  0x8e   : > { %1087 = vperm.xlu2 %1411, %v1029_v60  }
  0x8f   : > { %1082 = vperm.xlu1 %1410, %v1028_v61   ;;  %1077 = vperm.xlu0 %1409, %v1027_v62  }
  0x91   : > { %v370_v25 = vpop.permute.xlu1 %369  ;;  %v380_v28 = vpop.permute.xlu0 %379 }
  0x96   : > { %1102 = vperm.xlu2 %1411, %v1032_v63  }
  0x97   : > { %1097 = vperm.xlu1 %1410, %v1031_v0   ;;  %1092 = vperm.xlu0 %1409, %v1030_v1  }
  0x9d   : > { %v431_v4 = vpop.f32.mrf.mxu0  ;;  %v460_v5 = vpop.f32.mrf.mxu1 }
  0x9e   : > { %v432_v56 = vadd.f32 %v431_v4, %v345_v15  ;;  %v461_v63 = vadd.f32 %v460_v5, %v345_v15 }
  0x9f   : > { %1112 = vperm.xlu1 %1410, %v1034_v2   ;;  %1107 = vperm.xlu0 %1409, %v1033_v3  }
  0xa5   : > { %v433_v6 = vpop.f32.mrf.mxu0  ;;  %v462_v7 = vpop.f32.mrf.mxu1 }
  0xa6   : > { %v434_v48 = vadd.f32 %v433_v6, %v350_v20  ;;  %v463_v57 = vadd.f32 %v462_v7, %v350_v20  ;;  %v1370_v20 = vld [vmem:[%s1871_s3 + $0x10] sm:$0xff] }
  0xa8   : > { %v482_v0 = vmul.f32 0.2, %v434_v48 }
  0xad   : > { %v436_v8 = vpop.f32.mrf.mxu0  ;;  %v465_v9 = vpop.f32.mrf.mxu1 }
  0xae   : > { %v437_v41 = vadd.f32 %v436_v8, %v355_v13  ;;  %v466_v49 = vadd.f32 %v465_v9, %v355_v13  ;;  %v480_v8 = vmul.f32 0.2, %v432_v56  ;;  %v483_v9 = vmul.f32 0.2, %v463_v57 }
  0xb0   : > { %v484_v58 = vmul.f32 0.2, %v437_v41  ;;  %v485_v1 = vmul.f32 0.2, %v466_v49  ;;  %v499_v15 = vmax.f32 %v463_v57, %v483_v9 }
  0xb2   : > { %v501_v13 = vmax.f32 %v466_v49, %v485_v1 }
  0xb5   : > { %v438_v10 = vpop.f32.mrf.mxu0  ;;  %v467_v11 = vpop.f32.mrf.mxu1 }
  0xb6   : > { %v439_v34 = vadd.f32 %v438_v10, %v360_v19  ;;  %v468_v42 = vadd.f32 %v467_v11, %v360_v19  ;;  %v500_v10 = vmax.f32 %v437_v41, %v484_v58  ;;  %v481_v11 = vmul.f32 0.2, %v461_v63  ;;  %v1368_v19 = vld [vmem:[%s1871_s3] sm:$0xff] }
  0xb8   : > { %v486_v50 = vmul.f32 0.2, %v439_v34  ;;  %v487_v59 = vmul.f32 0.2, %v468_v42 }
  0xba   : > { %v502_v2 = vmax.f32 %v439_v34, %v486_v50  ;;  %v503_v4 = vmax.f32 %v468_v42, %v487_v59 }
  0xbc   : > { %v530_v5 = vpack.c.bf16 %v502_v2, %v500_v10 }
  0xbd   : > { %v441_v12 = vpop.f32.mrf.mxu0  ;;  %v470_v14 = vpop.f32.mrf.mxu1 }
  0xbe   : > { %v442_v29 = vadd.f32 %v441_v12, %v365_v17  ;;  %v471_v35 = vadd.f32 %v470_v14, %v365_v17  ;;  %v498_v12 = vmax.f32 %v434_v48, %v482_v0  ;;  %v496_v14 = vmax.f32 %v432_v56, %v480_v8 }
  0xbf   : > { %v497_v17 = vmax.f32 %v461_v63, %v481_v11 }
  0xc0   : > { %v488_v43 = vmul.f32 0.2, %v442_v29  ;;  %v489_v51 = vmul.f32 0.2, %v471_v35 }
  0xc2   : > { %v504_v60 = vmax.f32 %v442_v29, %v488_v43  ;;  %v505_v3 = vmax.f32 %v471_v35, %v489_v51  ;;  %v1375_v29 = vld [vmem:[%s1871_s3 + $0x38] sm:$0xff] }
  0xc5   : > { %v443_v16 = vpop.f32.mrf.mxu0  ;;  %v472_v18 = vpop.f32.mrf.mxu1 }
  0xc6   : > { %v444_v26 = vadd.f32 %v443_v16, %v370_v25  ;;  %v473_v31 = vadd.f32 %v472_v18, %v370_v25  ;;  %v531_v16 = vpack.c.bf16 %v503_v4, %v501_v13  ;;  %v528_v18 = vpack.c.bf16 %v498_v12, %v496_v14  ;;  %v1373_v25 = vld [vmem:[%s1871_s3 + $0x28] sm:$0xff] }
  0xc8   : > { %v490_v37 = vmul.f32 0.2, %v444_v26  ;;  %v491_v44 = vmul.f32 0.2, %v473_v31 }
  0xca   : > { %v506_v52 = vmax.f32 %v444_v26, %v490_v37  ;;  %v507_v61 = vmax.f32 %v473_v31, %v491_v44  ;;  %v1374_v26 = vld [vmem:[%s1871_s3 + $0x30] sm:$0xff] }
  0xcc   : > { %v532_v6 = vpack.c.bf16 %v506_v52, %v504_v60  ;;  %v533_v7 = vpack.c.bf16 %v507_v61, %v505_v3 }
  0xcd   : > { %v446_v21 = vpop.f32.mrf.mxu0  ;;  %v475_v22 = vpop.f32.mrf.mxu1 }
  0xce   : > { %v447_v24 = vadd.f32 %v446_v21, %v375_v23  ;;  %v476_v27 = vadd.f32 %v475_v22, %v375_v23  ;;  %v529_v21 = vpack.c.bf16 %v499_v15, %v497_v17  ;;  %v1369_v22 = vld [vmem:[%s1871_s3 + $0x8] sm:$0xff]  ;;  %v1371_v23 = vld [vmem:[%s1871_s3 + $0x18] sm:$0xff] }
  0xd0   : > { %v492_v32 = vmul.f32 0.2, %v447_v24  ;;  %v493_v38 = vmul.f32 0.2, %v476_v27 }
  0xd2   : > { %v508_v45 = vmax.f32 %v447_v24, %v492_v32  ;;  %v509_v53 = vmax.f32 %v476_v27, %v493_v38  ;;  %v1372_v24 = vld [vmem:[%s1871_s3 + $0x20] sm:$0xff]  ;;  %v718_v27 = vpop.permute.xlu2 %717 }
  0xd5   : > { %v448_v30 = vpop.f32.mrf.mxu0  ;;  %v477_v36 = vpop.f32.mrf.mxu1 }
  0xd6   : > { %v449_v33 = vadd.f32 %v448_v30, %v380_v28  ;;  %v478_v40 = vadd.f32 %v477_v36, %v380_v28  ;;  %v723_v28 = vpop.permute.xlu0 %722  ;;  %v728_v30 = vpop.permute.xlu1 %727 }
  0xd8   : > { %v494_v39 = vmul.f32 0.2, %v449_v33  ;;  %v495_v47 = vmul.f32 0.2, %v478_v40 }
  0xda   : > { %v510_v46 = vmax.f32 %v449_v33, %v494_v39  ;;  %v511_v54 = vmax.f32 %v478_v40, %v495_v47  ;;  %v733_v31 = vpop.permute.xlu2 %732 }
  0xdc   : > { %v534_v55 = vpack.c.bf16 %v510_v46, %v508_v45  ;;  %v535_v62 = vpack.c.bf16 %v511_v54, %v509_v53 }
  0xde   : > { %605 = vmatpush.bf16.msrb.mxu0 %v534_v55  ;;  %1376 = vmatpush.bf16.msra.mxu2 %v534_v55  ;;  %v1728_v32 = vpop.permute.xlu0 %737  ;;  %v1731_v33 = vpop.permute.xlu1 %742 }
  0xdf   : > { %654 = vmatpush.bf16.msrb.mxu1 %v535_v62  ;;  %1380 = vmatpush.bf16.msra.mxu3 %v535_v62 }
  0xe2   : > { %606 = vmatpush.bf16.msrb.mxu0 %v532_v6  ;;  %1377 = vmatpush.bf16.msra.mxu2 %v532_v6  ;;  %v1733_v34 = vpop.permute.xlu2 %747 }
  0xe3   : > { %655 = vmatpush.bf16.msrb.mxu1 %v533_v7  ;;  %1381 = vmatpush.bf16.msra.mxu3 %v533_v7 }
  0xe6   : > { %607 = vmatpush.bf16.msrb.mxu0 %v530_v5  ;;  %1378 = vmatpush.bf16.msra.mxu2 %v530_v5  ;;  %v1735_v35 = vpop.permute.xlu0 %752  ;;  %v1737_v36 = vpop.permute.xlu1 %757 }
  0xe7   : > { %656 = vmatpush.bf16.msrb.mxu1 %v531_v16  ;;  %1382 = vmatpush.bf16.msra.mxu3 %v531_v16 }
  0xea   : > { %608 = vmatpush.bf16.msrb.mxu0 %v528_v18  ;;  %1379 = vmatpush.bf16.msra.mxu2 %v528_v18  ;;  %v1739_v37 = vpop.permute.xlu2 %762 }
  0xeb   : > { %657 = vmatpush.bf16.msrb.mxu1 %v529_v21  ;;  %1383 = vmatpush.bf16.msra.mxu3 %v529_v21 }
  0xed   : > { %1345 = vmatmul.msk.bf16.vlgmr.msrb.gmra.mxu0 %vm576_vm2, %v1368_v19  ;;  %1347 = vmatmul.msk.bf16.vlgmr.msra.gmra.mxu2 %vm576_vm2, %v1370_v20 }
  0xee   : > { %1353 = vmatmul.msk.bf16.vlgmr.msrb.gmra.mxu1 %vm576_vm2, %v1368_v19  ;;  %1355 = vmatmul.msk.bf16.vlgmr.msra.gmra.mxu3 %vm576_vm2, %v1370_v20  ;;  %v1741_v38 = vpop.permute.xlu0 %767  ;;  %v1743_v39 = vpop.permute.xlu1 %772 }
  0xf2   : > { %v1745_v40 = vpop.permute.xlu2 %777 }
  0xf6   : > { %v1747_v41 = vpop.permute.xlu0 %782  ;;  %v1749_v42 = vpop.permute.xlu1 %787 }
  0xf7   : > { %1881 = vst [vmem:[#allocation2_spill] sm:$0xff] %v1749_v42 }
  0xfa   : > { %v1751_v43 = vpop.permute.xlu2 %792 }
  0xfb   : > { %1882 = vst [vmem:[#allocation3_spill] sm:$0xff] %v1751_v43 }
  0xfd   : > { %1346 = vmatmul.msk.bf16.gmra.mxu0 %vm576_vm2, %v1369_v22  ;;  %1348 = vmatmul.msk.bf16.gmra.mxu2 %vm576_vm2, %v1371_v23 }
  0xfe   : > { %1354 = vmatmul.msk.bf16.gmra.mxu1 %vm576_vm2, %v1369_v22  ;;  %1356 = vmatmul.msk.bf16.gmra.mxu3 %vm576_vm2, %v1371_v23  ;;  %v846_v44 = vpop.permute.xlu0 %845  ;;  %v851_v45 = vpop.permute.xlu1 %850 }
 0x102   : > { %v856_v46 = vpop.permute.xlu2 %855 }
 0x106   : > { %v861_v48 = vpop.permute.xlu0 %860  ;;  %v1753_v50 = vpop.permute.xlu1 %865 }
 0x10a   : > { %v1755_v52 = vpop.permute.xlu2 %870 }
 0x10d   : > { %1349 = vmatmul.msk.bf16.gmra.mxu2 %vm576_vm2, %v1372_v24 }
 0x10e   : > { %1357 = vmatmul.msk.bf16.gmra.mxu3 %vm576_vm2, %v1372_v24  ;;  %v1759_v55 = vpop.permute.xlu0 %875  ;;  %v1761_v57 = vpop.permute.xlu1 %880 }
 0x112   : > { %v1765_v60 = vpop.permute.xlu2 %885 }
 0x116   : > { %v1767_v62 = vpop.permute.xlu0 %890  ;;  %v1771_v1 = vpop.permute.xlu1 %895 }
 0x11a   : > { %v1775_v3 = vpop.permute.xlu2 %900 }
 0x11d   : > { %1350 = vmatmul.msk.bf16.gmra.mxu2 %vm576_vm2, %v1373_v25 }
 0x11e   : > { %1358 = vmatmul.msk.bf16.gmra.mxu3 %vm576_vm2, %v1373_v25  ;;  %v1777_v8 = vpop.permute.xlu0 %905  ;;  %v1783_v7 = vpop.permute.xlu1 %910 }
 0x11f   : > { %1883 = vst [vmem:[#allocation4_spill] sm:$0xff] %v1783_v7 }
 0x122   : > { %v1785_v11 = vpop.permute.xlu2 %915 }
 0x123   : > { %1884 = vst [vmem:[#allocation5_spill] sm:$0xff] %v1785_v11 }
 0x126   : > { %v1789_v15 = vpop.permute.xlu0 %920 }
 0x127   : > { %1885 = vst [vmem:[#allocation6_spill] sm:$0xff] %v1789_v15 }
 0x12d   : > { %1351 = vmatmul.msk.bf16.gmra.mxu2 %vm576_vm2, %v1374_v26 }
 0x12e   : > { %1359 = vmatmul.msk.bf16.gmra.mxu3 %vm576_vm2, %v1374_v26 }
 0x13d   : > { %1352 = vmatmul.msk.bf16.gmra.mxu2 %vm576_vm2, %v1375_v29 }
 0x13e   : > { %1360 = vmatmul.msk.bf16.gmra.mxu3 %vm576_vm2, %v1375_v29 }
 0x16a   : > { %v610_v53 = vpop.f32.mrf.mxu0 }
 0x16b   : > { %v659_v56 = vpop.f32.mrf.mxu1  ;;  %v795_v16 = vmul.f32 %v718_v27, %v610_v53 }
 0x16c   : > { %v796_v18 = vmul.f32 %v718_v27, %v659_v56 }
 0x16d   : > { %v923_v25 = vadd.f32 %v846_v44, %v795_v16 }
 0x16f   : > { %v955_v27 = vmul.f32 0.2, %v923_v25 }
 0x170   : > { %v620_v47 = vpop.f32.mrf.mxu2 }
 0x171   : > { %v669_v49 = vpop.f32.mrf.mxu3  ;;  %v803_v15 = vmul.f32 %v1728_v32, %v620_v47 }
 0x172   : > { %v612_v61 = vpop.f32.mrf.mxu0 }
 0x173   : > { %v661_v63 = vpop.f32.mrf.mxu1  ;;  %v797_v12 = vmul.f32 %v723_v28, %v612_v61  ;;  %v1038_v61 = vpop.permute.xlu1 %1037 }
 0x174   : > { %v798_v13 = vmul.f32 %v723_v28, %v661_v63  ;;  %v924_v28 = vadd.f32 %v846_v44, %v796_v18 }
 0x175   : > { %v925_v21 = vadd.f32 %v851_v45, %v797_v12  ;;  %v1043_v12 = vpop.permute.xlu2 %1042 }
 0x176   : > { %v926_v24 = vadd.f32 %v851_v45, %v798_v13  ;;  %v804_v45 = vmul.f32 %v1728_v32, %v669_v49 }
 0x177   : > { %v957_v63 = vmul.f32 0.2, %v925_v21 }
 0x178   : > { %v622_v51 = vpop.f32.mrf.mxu2  ;;  %v958_v53 = vmul.f32 0.2, %v926_v24 }
 0x179   : > { %v1757_v54 = vpop.f32.mrf.mxu3  ;;  %v805_v47 = vmul.f32 %v1731_v33, %v622_v51 }
 0x17a   : > { %v615_v6 = vpop.f32.mrf.mxu0  ;;  %v990_v16 = vmax.f32 %v926_v24, %v958_v53  ;;  %v806_v32 = vmul.f32 %v1731_v33, %v1757_v54 }
 0x17b   : > { %v664_v9 = vpop.f32.mrf.mxu1  ;;  %v799_v17 = vmul.f32 %v728_v30, %v615_v6  ;;  %v933_v24 = vadd.f32 %v1755_v52, %v805_v47 }
 0x17c   : > { %v800_v22 = vmul.f32 %v728_v30, %v664_v9  ;;  %v956_v30 = vmul.f32 0.2, %v924_v28  ;;  %v934_v33 = vadd.f32 %v1755_v52, %v806_v32 }
 0x17d   : > { %v927_v26 = vadd.f32 %v856_v46, %v799_v17  ;;  %v987_v17 = vmax.f32 %v923_v25, %v955_v27 }
 0x17e   : > { %v928_v43 = vadd.f32 %v856_v46, %v800_v22  ;;  %v931_v46 = vadd.f32 %v1753_v50, %v803_v15  ;;  %v988_v22 = vmax.f32 %v924_v28, %v956_v30  ;;  %v1118_v15 = vmul.f32 %v1043_v12, %v990_v16 }
 0x17f   : > { %v959_v56 = vmul.f32 0.2, %v927_v26  ;;  %v1115_v25 = vmul.f32 %v1038_v61, %v987_v17  ;;  %v966_v52 = vmul.f32 0.2, %v934_v33 }
 0x180   : > { %v625_v58 = vpop.f32.mrf.mxu2  ;;  %v960_v13 = vmul.f32 0.2, %v928_v43  ;;  %v963_v7 = vmul.f32 0.2, %v931_v46  ;;  %v1116_v53 = vmul.f32 %v1038_v61, %v988_v22 }
 0x181   : > { %v1763_v59 = vpop.f32.mrf.mxu3  ;;  %v991_v18 = vmax.f32 %v927_v26, %v959_v56  ;;  %v807_v49 = vmul.f32 %v1733_v34, %v625_v58 }
 0x182   : > { %v617_v5 = vpop.f32.mrf.mxu0  ;;  %v808_v28 = vmul.f32 %v1733_v34, %v1763_v59  ;;  %v995_v30 = vmax.f32 %v931_v46, %v963_v7 }
 0x183   : > { %v666_v19 = vpop.f32.mrf.mxu1  ;;  %v801_v23 = vmul.f32 %v733_v31, %v617_v5  ;;  %v1048_v5 = vpop.permute.xlu0 %1047  ;;  %v935_v54 = vadd.f32 %v1759_v55, %v807_v49 }
 0x184   : > { %v802_v29 = vmul.f32 %v733_v31, %v666_v19  ;;  %v989_v31 = vmax.f32 %v925_v21, %v957_v63  ;;  %v1053_v63 = vpop.permute.xlu1 %1052  ;;  %v1119_v26 = vmul.f32 %v1048_v5, %v991_v18 }
 0x185   : > { %v929_v11 = vadd.f32 %v861_v48, %v801_v23  ;;  %v992_v23 = vmax.f32 %v928_v43, %v960_v13  ;;  %v967_v61 = vmul.f32 0.2, %v935_v54 }
 0x186   : > { %v930_v42 = vadd.f32 %v861_v48, %v802_v29  ;;  %v932_v48 = vadd.f32 %v1753_v50, %v804_v45  ;;  %v1117_v21 = vmul.f32 %v1043_v12, %v989_v31  ;;  %v1058_v12 = vpop.permute.xlu2 %1057  ;;  %v1168_v45 = vadd.f32 %v1118_v15, %v1116_v53 }
 0x187   : > { %v961_v44 = vmul.f32 0.2, %v929_v11  ;;  %v965_v31 = vmul.f32 0.2, %v933_v24  ;;  %v1123_v46 = vmul.f32 %v1058_v12, %v995_v30 }
 0x188   : > { %v1769_v0 = vpop.f32.mrf.mxu2  ;;  %v962_v19 = vmul.f32 0.2, %v930_v42  ;;  %v964_v27 = vmul.f32 0.2, %v932_v48  ;;  %v1147_v58 = vadd.f32 %v1117_v21, %v1115_v25  ;;  %v998_v21 = vmax.f32 %v934_v33, %v966_v52 }
 0x189   : > { %v1773_v2 = vpop.f32.mrf.mxu3  ;;  %v993_v29 = vmax.f32 %v929_v11, %v961_v44  ;;  %v1120_v11 = vmul.f32 %v1048_v5, %v992_v23  ;;  %v936_v44 = vadd.f32 %v1759_v55, %v808_v28  ;;  %v809_v34 = vmul.f32 %v1735_v35, %v1769_v0 }
 0x18a   : > { %v994_v50 = vmax.f32 %v930_v42, %v962_v19  ;;  %v1148_v13 = vadd.f32 %v1147_v58, %v1119_v26  ;;  %v996_v59 = vmax.f32 %v932_v48, %v964_v27  ;;  %v810_v5 = vmul.f32 %v1735_v35, %v1773_v2 }
 0x18b   : > { %v1121_v56 = vmul.f32 %v1053_v63, %v993_v29  ;;  %v1063_v42 = vpop.permute.xlu0 %1062  ;;  %v1169_v47 = vadd.f32 %v1168_v45, %v1120_v11  ;;  %v997_v18 = vmax.f32 %v933_v24, %v965_v31  ;;  %v968_v55 = vmul.f32 0.2, %v936_v44 }
 0x18c   : > { %v1122_v16 = vmul.f32 %v1053_v63, %v994_v50  ;;  %v937_v32 = vadd.f32 %v1761_v57, %v809_v34  ;;  %v1068_v48 = vpop.permute.xlu1 %1067  ;;  %v1124_v49 = vmul.f32 %v1058_v12, %v996_v59  ;;  %v999_v2 = vmax.f32 %v935_v54, %v967_v61 }
 0x18d   : > { %v1149_v17 = vadd.f32 %v1148_v13, %v1121_v56  ;;  %v1125_v15 = vmul.f32 %v1063_v42, %v997_v18  ;;  %v1126_v50 = vmul.f32 %v1063_v42, %v998_v21 }
 0x18e   : > { %v1170_v22 = vadd.f32 %v1169_v47, %v1122_v16  ;;  %v969_v26 = vmul.f32 0.2, %v937_v32  ;;  %v1127_v33 = vmul.f32 %v1068_v48, %v999_v2 }
 0x18f   : > { %v1150_v29 = vadd.f32 %v1149_v17, %v1123_v46 }
 0x190   : > { %v1779_v10 = vpop.f32.mrf.mxu2  ;;  %v1171_v25 = vadd.f32 %v1170_v22, %v1124_v49  ;;  %v1001_v45 = vmax.f32 %v937_v32, %v969_v26 }
 0x191   : > { %v1781_v4 = vpop.f32.mrf.mxu3  ;;  %v811_v7 = vmul.f32 %v1737_v36, %v1779_v10  ;;  %v938_v10 = vadd.f32 %v1761_v57, %v810_v5  ;;  %v1151_v54 = vadd.f32 %v1150_v29, %v1125_v15 }
 0x192   : > { %v812_v0 = vmul.f32 %v1737_v36, %v1781_v4  ;;  %v1000_v4 = vmax.f32 %v936_v44, %v968_v55  ;;  %v1172_v31 = vadd.f32 %v1171_v25, %v1126_v50  ;;  %v1888_v50 = vld [vmem:[#allocation5_spill] sm:$0xff] }
 0x193   : > { %v939_v63 = vadd.f32 %v1765_v60, %v811_v7  ;;  %v1078_v58 = vpop.permute.xlu0 %1077 }
 0x194   : > { %v940_v28 = vadd.f32 %v1765_v60, %v812_v0  ;;  %v1128_v30 = vmul.f32 %v1068_v48, %v1000_v4  ;;  %v1886_v0 = vld [vmem:[#allocation4_spill] sm:$0xff] }
 0x196   : > { %v1173_v5 = vadd.f32 %v1172_v31, %v1128_v30 }
 0x198   : > { %v1787_v14 = vpop.f32.mrf.mxu2 }
 0x199   : > { %v1791_v20 = vpop.f32.mrf.mxu3  ;;  %v813_v23 = vmul.f32 %v1739_v37, %v1787_v14  ;;  %v1073_v14 = vpop.permute.xlu2 %1072 }
 0x19a   : > { %v814_v24 = vmul.f32 %v1739_v37, %v1791_v20  ;;  %v970_v37 = vmul.f32 0.2, %v938_v10  ;;  %v971_v20 = vmul.f32 0.2, %v939_v63  ;;  %v1129_v17 = vmul.f32 %v1073_v14, %v1001_v45 }
 0x19b   : > { %v941_v53 = vadd.f32 %v1767_v62, %v813_v23 }
 0x19c   : > { %v1002_v34 = vmax.f32 %v938_v10, %v970_v37  ;;  %v1003_v42 = vmax.f32 %v939_v63, %v971_v20  ;;  %v1887_v63 = vld [vmem:[#allocation2_spill] sm:$0xff] }
 0x19e   : > { %v1130_v22 = vmul.f32 %v1073_v14, %v1002_v34  ;;  %v1131_v32 = vmul.f32 %v1078_v58, %v1003_v42  ;;  %v1889_v42 = vld [vmem:[#allocation3_spill] sm:$0xff] }
 0x1a0   : > { %v1794_v6 = vpop.f32.mrf.mxu2  ;;  %v1174_v29 = vadd.f32 %v1173_v5, %v1130_v22 }
 0x1a1   : > { %v1797_v9 = vpop.f32.mrf.mxu3  ;;  %v815_v36 = vmul.f32 %v1741_v38, %v1794_v6  ;;  %v942_v6 = vadd.f32 %v1767_v62, %v814_v24  ;;  %v1152_v62 = vadd.f32 %v1151_v54, %v1127_v33  ;;  %v1088_v49 = vpop.permute.xlu2 %1087 }
 0x1a2   : > { %v816_v57 = vmul.f32 %v1741_v38, %v1797_v9  ;;  %v972_v38 = vmul.f32 0.2, %v940_v28  ;;  %v973_v9 = vmul.f32 0.2, %v941_v53  ;;  %v1093_v24 = vpop.permute.xlu0 %1092 }
 0x1a3   : > { %v943_v11 = vadd.f32 %v1771_v1, %v815_v36  ;;  %v974_v59 = vmul.f32 0.2, %v942_v6  ;;  %v1153_v55 = vadd.f32 %v1152_v62, %v1129_v17 }
 0x1a4   : > { %v1005_v46 = vmax.f32 %v941_v53, %v973_v9 }
 0x1a5   : > { %v975_v52 = vmul.f32 0.2, %v943_v11  ;;  %v1006_v21 = vmax.f32 %v942_v6, %v974_v59 }
 0x1a8   : > { %v637_v51 = vpop.f32.mrf.mxu2 }
 0x1a9   : > { %v686_v43 = vpop.f32.mrf.mxu3  ;;  %v817_v27 = vmul.f32 %v1743_v39, %v637_v51  ;;  %v944_v51 = vadd.f32 %v1771_v1, %v816_v57  ;;  %v1004_v1 = vmax.f32 %v940_v28, %v972_v38  ;;  %v1154_v28 = vadd.f32 %v1153_v55, %v1131_v32 }
 0x1aa   : > { %v818_v60 = vmul.f32 %v1743_v39, %v686_v43  ;;  %v1083_v43 = vpop.permute.xlu1 %1082 }
 0x1ab   : > { %v945_v13 = vadd.f32 %v1775_v3, %v817_v27  ;;  %v1132_v10 = vmul.f32 %v1078_v58, %v1004_v1  ;;  %v1133_v36 = vmul.f32 %v1083_v43, %v1005_v46  ;;  %v1134_v27 = vmul.f32 %v1083_v43, %v1006_v21  ;;  %v1103_v43 = vpop.permute.xlu2 %1102  ;;  %v1890_v1 = vld [vmem:[#allocation6_spill] sm:$0xff] }
 0x1ac   : > { %v946_v61 = vadd.f32 %v1775_v3, %v818_v60  ;;  %v1007_v3 = vmax.f32 %v943_v11, %v975_v52 }
 0x1ad   : > { %v977_v18 = vmul.f32 0.2, %v945_v13  ;;  %v1175_v20 = vadd.f32 %v1174_v29, %v1132_v10 }
 0x1ae   : > { %v978_v23 = vmul.f32 0.2, %v946_v61  ;;  %v1135_v33 = vmul.f32 %v1088_v49, %v1007_v3 }
 0x1af   : > { %v1009_v4 = vmax.f32 %v945_v13, %v977_v18  ;;  %v1176_v9 = vadd.f32 %v1175_v20, %v1134_v27 }
 0x1b0   : > { %v640_v19 = vpop.f32.mrf.mxu2  ;;  %v1010_v54 = vmax.f32 %v946_v61, %v978_v23 }
 0x1b1   : > { %v689_v35 = vpop.f32.mrf.mxu3  ;;  %v819_v56 = vmul.f32 %v1745_v40, %v640_v19  ;;  %v1137_v30 = vmul.f32 %v1093_v24, %v1009_v4 }
 0x1b2   : > { %v820_v44 = vmul.f32 %v1745_v40, %v689_v35  ;;  %v976_v40 = vmul.f32 0.2, %v944_v51  ;;  %v1098_v60 = vpop.permute.xlu1 %1097  ;;  %v1138_v13 = vmul.f32 %v1093_v24, %v1010_v54 }
 0x1b3   : > { %v947_v47 = vadd.f32 %v1777_v8, %v819_v56  ;;  %v1155_v56 = vadd.f32 %v1154_v28, %v1133_v36 }
 0x1b4   : > { %v948_v19 = vadd.f32 %v1777_v8, %v820_v44  ;;  %v1008_v8 = vmax.f32 %v944_v51, %v976_v40  ;;  %v1108_v40 = vpop.permute.xlu0 %1107 }
 0x1b5   : > { %v979_v35 = vmul.f32 0.2, %v947_v47  ;;  %v1156_v51 = vadd.f32 %v1155_v56, %v1135_v33  ;;  %v1195_v33 = vlaneseq }
 0x1b6   : > { %v980_v25 = vmul.f32 0.2, %v948_v19 }
 0x1b7   : > { %v1011_v37 = vmax.f32 %v947_v47, %v979_v35  ;;  %v1157_v52 = vadd.f32 %v1156_v51, %v1137_v30  ;;  %vm1197_vm4 = vcmp.lt.s32.totalorder %v1195_v33, 256 }
 0x1b8   : > { %v642_v12 = vpop.f32.mrf.mxu2  ;;  %v1012_v45 = vmax.f32 %v948_v19, %v980_v25 }
 0x1b9   : > { %v691_v16 = vpop.f32.mrf.mxu3  ;;  %v821_v39 = vmul.f32 %v1747_v41, %v642_v12  ;;  %v1136_v12 = vmul.f32 %v1088_v49, %v1008_v8  ;;  %v1139_v44 = vmul.f32 %v1098_v60, %v1011_v37 }
 0x1ba   : > { %v822_v7 = vmul.f32 %v1747_v41, %v691_v16  ;;  %v1140_v61 = vmul.f32 %v1098_v60, %v1012_v45  ;;  %v1113_v35 = vpop.permute.xlu1 %1112 }
 0x1bb   : > { %v949_v48 = vadd.f32 %v1886_v0, %v821_v39  ;;  %v1177_v59 = vadd.f32 %v1176_v9, %v1136_v12  ;;  %v1158_v19 = vadd.f32 %v1157_v52, %v1139_v44 }
 0x1bc   : > { %v950_v41 = vadd.f32 %v1886_v0, %v822_v7 }
 0x1bd   : > { %v981_v14 = vmul.f32 0.2, %v949_v48  ;;  %v1178_v18 = vadd.f32 %v1177_v59, %v1138_v13 }
 0x1be   : > { %v982_v58 = vmul.f32 0.2, %v950_v41 }
 0x1bf   : > { %v1013_v31 = vmax.f32 %v949_v48, %v981_v14  ;;  %v1179_v48 = vadd.f32 %v1178_v18, %v1140_v61 }
 0x1c0   : > { %v645_v2 = vpop.f32.mrf.mxu2  ;;  %v1014_v62 = vmax.f32 %v950_v41, %v982_v58 }
 0x1c1   : > { %v823_v15 = vmul.f32 %v1887_v63, %v645_v2  ;;  %v694_v26 = vpop.f32.mrf.mxu3  ;;  %v1141_v17 = vmul.f32 %v1103_v43, %v1013_v31 }
 0x1c2   : > { %v824_v57 = vmul.f32 %v1887_v63, %v694_v26  ;;  %v1142_v55 = vmul.f32 %v1103_v43, %v1014_v62 }
 0x1c3   : > { %v951_v53 = vadd.f32 %v1888_v50, %v823_v15  ;;  %v1159_v49 = vadd.f32 %v1158_v19, %v1141_v17 }
 0x1c4   : > { %v952_v11 = vadd.f32 %v1888_v50, %v824_v57  ;;  %v1180_v2 = vadd.f32 %v1179_v48, %v1142_v55 }
 0x1c5   : > { %v983_v6 = vmul.f32 0.2, %v951_v53 }
 0x1c6   : > { %v984_v38 = vmul.f32 0.2, %v952_v11 }
 0x1c7   : > { %v1015_v34 = vmax.f32 %v951_v53, %v983_v6 }
 0x1c8   : > { %v647_v16 = vpop.f32.mrf.mxu2  ;;  %v1016_v5 = vmax.f32 %v952_v11, %v984_v38 }
 0x1c9   : > { %v825_v39 = vmul.f32 %v1889_v42, %v647_v16  ;;  %v696_v47 = vpop.f32.mrf.mxu3  ;;  %v1143_v22 = vmul.f32 %v1108_v40, %v1015_v34 }
 0x1ca   : > { %v826_v46 = vmul.f32 %v1889_v42, %v696_v47  ;;  %v1144_v21 = vmul.f32 %v1108_v40, %v1016_v5 }
 0x1cb   : > { %v953_v7 = vadd.f32 %v1890_v1, %v825_v39  ;;  %v1160_v29 = vadd.f32 %v1159_v49, %v1143_v22 }
 0x1cc   : > { %v954_v0 = vadd.f32 %v1890_v1, %v826_v46  ;;  %v1181_v63 = vadd.f32 %v1180_v2, %v1144_v21 }
 0x1cd   : > { %v985_v32 = vmul.f32 0.2, %v953_v7 }
 0x1ce   : > { %v986_v23 = vmul.f32 0.2, %v954_v0 }
 0x1cf   : > { %v1017_v3 = vmax.f32 %v953_v7, %v985_v32 }
 0x1d0   : > { %v1018_v41 = vmax.f32 %v954_v0, %v986_v23 }
 0x1d1   : > { %v1145_v10 = vmul.f32 %v1113_v35, %v1017_v3 }
 0x1d2   : > { %v1146_v24 = vmul.f32 %v1113_v35, %v1018_v41 }
 0x1d3   : > { %v1161_v15 = vadd.f32 %v1160_v29, %v1145_v10 }
 0x1d4   : > { %v1182_v8 = vadd.f32 %v1181_v63, %v1146_v24 }
 0x1d5   : > { %v1162_v36 = vrot.slane %v1161_v15, 4 }
 0x1d6   : > { %v1183_v25 = vrot.slane %v1182_v8, 4 }
 0x1d7   : > { %v1163_v4 = vadd.f32 %v1162_v36, %v1161_v15 }
 0x1d8   : > { %v1184_v28 = vadd.f32 %v1183_v25, %v1182_v8 }
 0x1d9   : > { %v1164_v26 = vrot.slane %v1163_v4, 2 }
 0x1da   : > { %v1185_v50 = vrot.slane %v1184_v28, 2 }
 0x1db   : > { %v1165_v14 = vadd.f32 %v1164_v26, %v1163_v4 }
 0x1dc   : > { %v1186_v53 = vadd.f32 %v1185_v50, %v1184_v28 }
 0x1dd   : > { %v1166_v57 = vrot.slane %v1165_v14, 1 }
 0x1de   : > { %v1187_v27 = vrot.slane %v1186_v53, 1 }
 0x1df   : > { %v1167_v37 = vadd.f32 %v1166_v57, %v1165_v14 }
 0x1e0   : > { %v1188_v54 = vadd.f32 %v1187_v27, %v1186_v53 }
 0x1e2   : > { %v1191_v20 = vrot.slane %v1188_v54, 7 }
 0x1e4   : > { %v1193_v58 = vsel %vm1192_vm3, %v1167_v37, %v1191_v20 }
 0x1e5   : > { %1199 = vst.msk [vmem:[%s314_s15] sm:$0x3] %vm1197_vm4, %v1193_v58 }
 0x1e6 PF: > { %s17_s26 = sadd.s32 1, %s1434_s26   ;;  %s1891_s24 = smov %s1430_s25 }
 0x1e7   : > { %p14_p5 = scmp.ge.s32.totalorder %s17_s26, 4   ;;  %s1892_s25 = smov %s1894_s27 }
 0x1e9   :  { %16 = sbr.rel (!%p14_p5) target bundleno = 2 (0x2), region = 78 }

// kernel: pixel_discriminator.2
= control target key start
LH: loop header
LB: loop body
LE: loop exit
PB: predicated region body
PF: predicated region fallthrough
CT: control target
= control target key end

     0   :  { %s1206_s18 = smov 0   ;;  %s1208_s19 = smov 0   ;;  %s1498_s0 = inlined_call_operand.vmem [shape: f32[2,4,256], index: 0, kind: input, shape index: {}]   ;;  %s1499_s1 = inlined_call_operand.vmem [shape: bf16[64,4], index: 1, kind: input, shape index: {}]   ;;  %s1500_s2 = inlined_call_operand.vmem [shape: f32[64,1], index: 2, kind: input, shape index: {}]   ;;  %s1501_s3 = inlined_call_operand.vmem [shape: bf16[128,64], index: 3, kind: input, shape index: {}]   ;;  %s1502_s4 = inlined_call_operand.vmem [shape: f32[2,128,1], index: 4, kind: output, shape index: {0}]   ;;  %s1503_s5 = inlined_call_operand.vmem [shape: f32[2,128,1], index: 5, kind: output, shape index: {1}]  }
   0x1   :  { %s1210_s20 = smov 0  }
   0x2 LB: > { %s28_s21 = sadd.s32 1, %s1168_s19  ;;  %p1017_p0 = scmp.ge.s32.totalorder %s1172_s20, 1  ;;  %s1172_s20 = sphi %s1210_s20, %s16_s20   ;;  %s1168_s19 = sphi %s1208_s19, %s1505_s19   ;;  %s1164_s18 = sphi %s1206_s18, %s1504_s18  }
   0x3   : > { %p30_p1 = scmp.ge.s32.totalorder %s28_s21, 2  ;;  %p209_p2 = scmp.lt.s32.totalorder %s1172_s20, 3 }
   0x5   : > { %s1507_s21 = smov (%p30_p1, %s28_s21), 0  ;;  %p210_p3 = pnand %p1017_p0, %p209_p2 }
   0x6   : > { %p247_p4 = scmp.lt.s32.totalorder (!%p210_p3), %s1164_s18, 1 }
   0x7   : > { %213 = sbr.rel (%p210_p3) target bundleno = 586 (0x24a), region = 36 }
   0xc   : > { %v327_v0 = vld [vmem:[%s1500_s2 + $0x30] sm:$0xff]  ;;  %v1174_v1 = vmov 0   ;;  %v325_v2 = vld [vmem:[%s1500_s2 + $0x20] sm:$0xff]  ;;  %s1509_s18 = smov (!%p247_p4, %s1164_s18), 1  ;;  %v328_v4 = vld [vmem:[%s1500_s2 + $0x38] sm:$0xff]  ;;  %vm402_vm0 = vcmask 1041408  }
   0xd   : > { %1147 = vset.pattern.permute.xlu0 %v1174_v1  ;;  %1148 = vset.pattern.permute.xlu1 %v1174_v1  ;;  %s1098_s26 = sshll.u32 %s1509_s18, 3  ;;  %v326_v5 = vld [vmem:[%s1500_s2 + $0x28] sm:$0xff]  ;;  %v321_v10 = vld [vmem:[%s1500_s2] sm:$0xff]  ;;  %vm389_vm1 = vcmask 31744   ;;  %v323_v16 = vld [vmem:[%s1500_s2 + $0x10] sm:$0xff]  ;;  %vm563_vm2 = vcmask 523264  }
   0xe   : > { %361 = vperm.xlu0 %1147, %v327_v0   ;;  %351 = vperm.xlu1 %1148, %v325_v2   ;;  %s254_s29 = scalar_lea.vmem %s1498_s0, %s1098_s26  ;;  %v322_v11 = vld [vmem:[%s1500_s2 + $0x8] sm:$0xff]  ;;  %v1101_v14 = vld [vmem:[%s1499_s1] sm:$0xff]  ;;  %v324_v17 = vld [vmem:[%s1500_s2 + $0x18] sm:$0xff]  ;;  %s1099_s24 = sshll.u32 %s1509_s18, 7  ;;  %vm271_vm3 = vcmask 7168  }
   0xf   : > { %1149 = vset.pattern.permute.xlu2 %v1174_v1  ;;  %v304_v3 = vld [vmem:[%s254_s29] sm:$0xff]  ;;  %v1102_v15 = vld [vmem:[%s1499_s1 + $0x8] sm:$0xff]  ;;  %v1103_v18 = vld [vmem:[%s1499_s1 + $0x10] sm:$0xff]  ;;  %s1320_s27 = scalar_lea.vmem %s1502_s4, %s1099_s24  ;;  %s1353_s30 = scalar_lea.vmem %s1503_s5, %s1099_s24 }
  0x10   : > { %306 = vst [vmem:[#allocation1] ss:$2 sm:$0xff] %v304_v3  ;;  %341 = vperm.xlu2 %1149, %v323_v16   ;;  %v1104_v19 = vld [vmem:[%s1499_s1 + $0x18] sm:$0xff] }
  0x16   : > { %366 = vperm.xlu0 %1147, %v328_v4   ;;  %356 = vperm.xlu1 %1148, %v326_v5  }
  0x17   : > { %v307_v6 = vld.sshfl [vmem:[#allocation1] sm:$0xff pattern:$0x75316420]  ;;  %v308_v7 = vld.sshfl [vmem:[#allocation1 + $0x8] sm:$0xff pattern:$0x75316420] }
  0x18   : > { %v311_v8 = vpack.c.bf16 %v307_v6, %v307_v6  ;;  %v312_v9 = vpack.c.bf16 %v308_v7, %v308_v7  ;;  %346 = vperm.xlu2 %1149, %v324_v17  }
  0x1a   : > { %v404_v12 = vsel %vm402_vm0, %v311_v8, 0  ;;  %v407_v13 = vsel %vm402_vm0, %v312_v9, 0 }
  0x1b   : > { %416 = vmatpush.bf16.msra.mxu0 %v404_v12  ;;  %445 = vmatpush.bf16.msra.mxu1 %v407_v13 }
  0x1e   : > { %331 = vperm.xlu0 %1147, %v321_v10   ;;  %336 = vperm.xlu1 %1148, %v322_v11  }
  0x1f   : > { %1040 = vmatmul.msk.bf16.vlgmr.msra.gmra.mxu0 %vm389_vm1, %v1101_v14  ;;  %1044 = vmatmul.msk.bf16.vlgmr.msra.gmra.mxu1 %vm389_vm1, %v1101_v14 }
  0x2f   : > { %1041 = vmatmul.msk.bf16.gmra.mxu0 %vm389_vm1, %v1102_v15  ;;  %1045 = vmatmul.msk.bf16.gmra.mxu1 %vm389_vm1, %v1102_v15 }
  0x3f   : > { %1042 = vmatmul.msk.bf16.gmra.mxu0 %vm389_vm1, %v1103_v18  ;;  %1046 = vmatmul.msk.bf16.gmra.mxu1 %vm389_vm1, %v1103_v18 }
  0x4f   : > { %1043 = vmatmul.msk.bf16.gmra.mxu0 %vm389_vm1, %v1104_v19  ;;  %1047 = vmatmul.msk.bf16.gmra.mxu1 %vm389_vm1, %v1104_v19 }
  0x6a   : > { %v342_v34 = vpop.permute.xlu2 %341 }
  0x72   : > { %v347_v41 = vpop.permute.xlu2 %346 }
  0x80   : > { %v352_v30 = vpop.permute.xlu1 %351  ;;  %v362_v33 = vpop.permute.xlu0 %361 }
  0x88   : > { %v357_v37 = vpop.permute.xlu1 %356  ;;  %v367_v38 = vpop.permute.xlu0 %366 }
  0x90   : > { %v337_v52 = vpop.permute.xlu1 %336  ;;  %v332_v1 = vpop.permute.xlu0 %331 }
  0x9c   : > { %v418_v20 = vpop.f32.mrf.mxu0  ;;  %v447_v21 = vpop.f32.mrf.mxu1 }
  0x9d   : > { %v419_v12 = vadd.f32 %v418_v20, %v332_v1  ;;  %v448_v15 = vadd.f32 %v447_v21, %v332_v1 }
  0x9f   : > { %v468_v20 = vmul.f32 0.2, %v448_v15 }
  0xa4   : > { %v420_v22 = vpop.f32.mrf.mxu0  ;;  %v449_v23 = vpop.f32.mrf.mxu1 }
  0xa5   : > { %v421_v2 = vadd.f32 %v420_v22, %v337_v52  ;;  %v450_v9 = vadd.f32 %v449_v23, %v337_v52 }
  0xa7   : > { %v469_v18 = vmul.f32 0.2, %v421_v2 }
  0xac   : > { %v423_v24 = vpop.f32.mrf.mxu0  ;;  %v452_v25 = vpop.f32.mrf.mxu1 }
  0xad   : > { %v424_v57 = vadd.f32 %v423_v24, %v342_v34  ;;  %v453_v3 = vadd.f32 %v452_v25, %v342_v34  ;;  %v470_v24 = vmul.f32 0.2, %v450_v9 }
  0xaf   : > { %v471_v13 = vmul.f32 0.2, %v424_v57  ;;  %v472_v16 = vmul.f32 0.2, %v453_v3 }
  0xb1   : > { %v487_v23 = vmax.f32 %v424_v57, %v471_v13 }
  0xb4   : > { %v425_v26 = vpop.f32.mrf.mxu0  ;;  %v454_v27 = vpop.f32.mrf.mxu1 }
  0xb5   : > { %v426_v53 = vadd.f32 %v425_v26, %v347_v41  ;;  %v455_v58 = vadd.f32 %v454_v27, %v347_v41  ;;  %v467_v27 = vmul.f32 0.2, %v419_v12  ;;  %v1110_v41 = vld [vmem:[%s1501_s3 + $0x28] sm:$0xff] }
  0xb7   : > { %v473_v5 = vmul.f32 0.2, %v426_v53  ;;  %v474_v10 = vmul.f32 0.2, %v455_v58 }
  0xb9   : > { %v489_v19 = vmax.f32 %v426_v53, %v473_v5  ;;  %v490_v25 = vmax.f32 %v455_v58, %v474_v10 }
  0xbb   : > { %v517_v21 = vpack.c.bf16 %v489_v19, %v487_v23 }
  0xbc   : > { %v428_v28 = vpop.f32.mrf.mxu0  ;;  %v457_v29 = vpop.f32.mrf.mxu1 }
  0xbd   : > { %v429_v43 = vadd.f32 %v428_v28, %v352_v30  ;;  %v458_v51 = vadd.f32 %v457_v29, %v352_v30  ;;  %v488_v28 = vmax.f32 %v453_v3, %v472_v16  ;;  %v485_v29 = vmax.f32 %v421_v2, %v469_v18 }
  0xbe   : > { %v486_v30 = vmax.f32 %v450_v9, %v470_v24 }
  0xbf   : > { %v475_v59 = vmul.f32 0.2, %v429_v43  ;;  %v476_v4 = vmul.f32 0.2, %v458_v51 }
  0xc1   : > { %v491_v14 = vmax.f32 %v429_v43, %v475_v59  ;;  %v492_v17 = vmax.f32 %v458_v51, %v476_v4  ;;  %v1112_v43 = vld [vmem:[%s1501_s3 + $0x38] sm:$0xff] }
  0xc4   : > { %v430_v31 = vpop.f32.mrf.mxu0  ;;  %v459_v32 = vpop.f32.mrf.mxu1 }
  0xc5   : > { %v431_v42 = vadd.f32 %v430_v31, %v357_v37  ;;  %v460_v44 = vadd.f32 %v459_v32, %v357_v37  ;;  %v518_v31 = vpack.c.bf16 %v490_v25, %v488_v28  ;;  %v483_v32 = vmax.f32 %v419_v12, %v467_v27  ;;  %v1107_v37 = vld [vmem:[%s1501_s3 + $0x10] sm:$0xff] }
  0xc7   : > { %v477_v54 = vmul.f32 0.2, %v431_v42  ;;  %v478_v60 = vmul.f32 0.2, %v460_v44  ;;  %v515_v34 = vpack.c.bf16 %v485_v29, %v483_v32 }
  0xc9   : > { %v493_v6 = vmax.f32 %v431_v42, %v477_v54  ;;  %v494_v11 = vmax.f32 %v460_v44, %v478_v60  ;;  %v1111_v42 = vld [vmem:[%s1501_s3 + $0x30] sm:$0xff] }
  0xcb   : > { %v519_v22 = vpack.c.bf16 %v493_v6, %v491_v14  ;;  %v520_v26 = vpack.c.bf16 %v494_v11, %v492_v17 }
  0xcc   : > { %v433_v35 = vpop.f32.mrf.mxu0  ;;  %v462_v36 = vpop.f32.mrf.mxu1 }
  0xcd   : > { %v434_v39 = vadd.f32 %v433_v35, %v362_v33  ;;  %v463_v40 = vadd.f32 %v462_v36, %v362_v33  ;;  %v484_v33 = vmax.f32 %v448_v15, %v468_v20  ;;  %v1105_v36 = vld [vmem:[%s1501_s3] sm:$0xff] }
  0xcf   : > { %v479_v47 = vmul.f32 0.2, %v434_v39  ;;  %v480_v48 = vmul.f32 0.2, %v463_v40  ;;  %v516_v35 = vpack.c.bf16 %v486_v30, %v484_v33 }
  0xd1   : > { %v495_v61 = vmax.f32 %v434_v39, %v479_v47  ;;  %v496_v62 = vmax.f32 %v463_v40, %v480_v48  ;;  %v1108_v39 = vld [vmem:[%s1501_s3 + $0x18] sm:$0xff]  ;;  %v1109_v40 = vld [vmem:[%s1501_s3 + $0x20] sm:$0xff] }
  0xd4   : > { %v435_v45 = vpop.f32.mrf.mxu0  ;;  %v464_v46 = vpop.f32.mrf.mxu1 }
  0xd5   : > { %v436_v49 = vadd.f32 %v435_v45, %v367_v38  ;;  %v465_v50 = vadd.f32 %v464_v46, %v367_v38  ;;  %v1106_v38 = vld [vmem:[%s1501_s3 + $0x8] sm:$0xff] }
  0xd7   : > { %v481_v55 = vmul.f32 0.2, %v436_v49  ;;  %v482_v56 = vmul.f32 0.2, %v465_v50 }
  0xd9   : > { %v497_v63 = vmax.f32 %v436_v49, %v481_v55  ;;  %v498_v0 = vmax.f32 %v465_v50, %v482_v56 }
  0xdb   : > { %v521_v7 = vpack.c.bf16 %v497_v63, %v495_v61  ;;  %v522_v8 = vpack.c.bf16 %v498_v0, %v496_v62 }
  0xdd   : > { %592 = vmatpush.bf16.msrb.mxu0 %v521_v7  ;;  %1113 = vmatpush.bf16.msra.mxu2 %v521_v7 }
  0xde   : > { %641 = vmatpush.bf16.msrb.mxu1 %v522_v8  ;;  %1117 = vmatpush.bf16.msra.mxu3 %v522_v8 }
  0xe1   : > { %593 = vmatpush.bf16.msrb.mxu0 %v519_v22  ;;  %1114 = vmatpush.bf16.msra.mxu2 %v519_v22 }
  0xe2   : > { %642 = vmatpush.bf16.msrb.mxu1 %v520_v26  ;;  %1118 = vmatpush.bf16.msra.mxu3 %v520_v26 }
  0xe5   : > { %594 = vmatpush.bf16.msrb.mxu0 %v517_v21  ;;  %1115 = vmatpush.bf16.msra.mxu2 %v517_v21 }
  0xe6   : > { %643 = vmatpush.bf16.msrb.mxu1 %v518_v31  ;;  %1119 = vmatpush.bf16.msra.mxu3 %v518_v31 }
  0xe9   : > { %595 = vmatpush.bf16.msrb.mxu0 %v515_v34  ;;  %1116 = vmatpush.bf16.msra.mxu2 %v515_v34 }
  0xea   : > { %644 = vmatpush.bf16.msrb.mxu1 %v516_v35  ;;  %1120 = vmatpush.bf16.msra.mxu3 %v516_v35 }
  0xec   : > { %1080 = vmatmul.msk.bf16.vlgmr.msrb.gmra.mxu0 %vm563_vm2, %v1105_v36  ;;  %1082 = vmatmul.msk.bf16.vlgmr.msra.gmra.mxu2 %vm563_vm2, %v1107_v37 }
  0xed   : > { %1088 = vmatmul.msk.bf16.vlgmr.msrb.gmra.mxu1 %vm563_vm2, %v1105_v36  ;;  %1090 = vmatmul.msk.bf16.vlgmr.msra.gmra.mxu3 %vm563_vm2, %v1107_v37 }
  0xfc   : > { %1081 = vmatmul.msk.bf16.gmra.mxu0 %vm563_vm2, %v1106_v38  ;;  %1083 = vmatmul.msk.bf16.gmra.mxu2 %vm563_vm2, %v1108_v39 }
  0xfd   : > { %1089 = vmatmul.msk.bf16.gmra.mxu1 %vm563_vm2, %v1106_v38  ;;  %1091 = vmatmul.msk.bf16.gmra.mxu3 %vm563_vm2, %v1108_v39 }
 0x10c   : > { %1084 = vmatmul.msk.bf16.gmra.mxu2 %vm563_vm2, %v1109_v40 }
 0x10d   : > { %1092 = vmatmul.msk.bf16.gmra.mxu3 %vm563_vm2, %v1109_v40 }
 0x11c   : > { %1085 = vmatmul.msk.bf16.gmra.mxu2 %vm563_vm2, %v1110_v41 }
 0x11d   : > { %1093 = vmatmul.msk.bf16.gmra.mxu3 %vm563_vm2, %v1110_v41 }
 0x12c   : > { %1086 = vmatmul.msk.bf16.gmra.mxu2 %vm563_vm2, %v1111_v42 }
 0x12d   : > { %1094 = vmatmul.msk.bf16.gmra.mxu3 %vm563_vm2, %v1111_v42 }
 0x13c   : > { %1087 = vmatmul.msk.bf16.gmra.mxu2 %vm563_vm2, %v1112_v43 }
 0x13d   : > { %1095 = vmatmul.msk.bf16.gmra.mxu3 %vm563_vm2, %v1112_v43 }
 0x169   : > { %v597_v44 = vpop.f32.mrf.mxu0 }
 0x16a   : > { %v646_v45 = vpop.f32.mrf.mxu1  ;;  %v799_v47 = vmul.f32 %v597_v44, %v597_v44 }
 0x16b   : > { %v702_v46 = vadd.f32 %v646_v45, %v597_v44  ;;  %v800_v48 = vmul.f32 %v646_v45, %v646_v45 }
 0x16d   : > { %703 = vadd.xlane.f32.xlu2 %v702_v46  ;;  %v831_v52 = vadd.f32 %v800_v48, %v799_v47 }
 0x16f   : > { %v607_v49 = vpop.f32.mrf.mxu2 }
 0x170   : > { %v656_v50 = vpop.f32.mrf.mxu3  ;;  %v807_v55 = vmul.f32 %v607_v49, %v607_v49 }
 0x171   : > { %v599_v51 = vpop.f32.mrf.mxu0  ;;  %v808_v56 = vmul.f32 %v656_v50, %v656_v50  ;;  %v714_v61 = vadd.f32 %v656_v50, %v607_v49 }
 0x172   : > { %v648_v53 = vpop.f32.mrf.mxu1  ;;  %v801_v0 = vmul.f32 %v599_v51, %v599_v51 }
 0x173   : > { %v705_v54 = vadd.f32 %v648_v53, %v599_v51  ;;  %v843_v62 = vadd.f32 %v808_v56, %v807_v55  ;;  %v802_v1 = vmul.f32 %v648_v53, %v648_v53 }
 0x175   : > { %832 = vadd.xlane.f32.xlu2 %v831_v52  ;;  %706 = vadd.xlane.f32.xlu0 %v705_v54  ;;  %v834_v9 = vadd.f32 %v802_v1, %v801_v0 }
 0x177   : > { %v609_v57 = vpop.f32.mrf.mxu2 }
 0x178   : > { %v658_v58 = vpop.f32.mrf.mxu3  ;;  %v809_v3 = vmul.f32 %v609_v57, %v609_v57 }
 0x179   : > { %v602_v59 = vpop.f32.mrf.mxu0  ;;  %v810_v4 = vmul.f32 %v658_v58, %v658_v58  ;;  %v717_v18 = vadd.f32 %v658_v58, %v609_v57  ;;  %v1175_v58 = vmov 0.0  }
 0x17a   : > { %v651_v60 = vpop.f32.mrf.mxu1  ;;  %v803_v11 = vmul.f32 %v602_v59, %v602_v59  ;;  %272 = vst.msk [vmem:[%s1320_s27] sm:$0xff] %vm271_vm3, %v1175_v58 }
 0x17b   : > { %v708_v63 = vadd.f32 %v651_v60, %v602_v59  ;;  %v846_v10 = vadd.f32 %v810_v4, %v809_v3  ;;  %v804_v12 = vmul.f32 %v651_v60, %v651_v60  ;;  %273 = vst.msk [vmem:[%s1320_s27 + $0x8] sm:$0xff] %vm271_vm3, %v1175_v58 }
 0x17c   : > { %274 = vst.msk [vmem:[%s1320_s27 + $0x10] sm:$0xff] %vm271_vm3, %v1175_v58 }
 0x17d   : > { %715 = vadd.xlane.f32.xlu2 %v714_v61  ;;  %844 = vadd.xlane.f32.xlu0 %v843_v62  ;;  %v837_v17 = vadd.f32 %v804_v12, %v803_v11  ;;  %275 = vst.msk [vmem:[%s1320_s27 + $0x18] sm:$0xff] %vm271_vm3, %v1175_v58 }
 0x17e   : > { %709 = vadd.xlane.f32.xlu1 %v708_v63  ;;  %276 = vst.msk [vmem:[%s1320_s27 + $0x20] sm:$0xff] %vm271_vm3, %v1175_v58 }
 0x17f   : > { %v612_v2 = vpop.f32.mrf.mxu2  ;;  %277 = vst.msk [vmem:[%s1320_s27 + $0x28] sm:$0xff] %vm271_vm3, %v1175_v58 }
 0x180   : > { %v661_v5 = vpop.f32.mrf.mxu3  ;;  %v811_v13 = vmul.f32 %v612_v2, %v612_v2  ;;  %278 = vst.msk [vmem:[%s1320_s27 + $0x30] sm:$0xff] %vm271_vm3, %v1175_v58 }
 0x181   : > { %v604_v6 = vpop.f32.mrf.mxu0  ;;  %v812_v14 = vmul.f32 %v661_v5, %v661_v5  ;;  %v720_v29 = vadd.f32 %v661_v5, %v612_v2  ;;  %279 = vst.msk [vmem:[%s1320_s27 + $0x38] sm:$0xff] %vm271_vm3, %v1175_v58 }
 0x182   : > { %v653_v7 = vpop.f32.mrf.mxu1  ;;  %v805_v22 = vmul.f32 %v604_v6, %v604_v6  ;;  %280 = vst.msk [vmem:[%s1320_s27 + $0x40] sm:$0xff] %vm271_vm3, %v1175_v58 }
 0x183   : > { %v711_v8 = vadd.f32 %v653_v7, %v604_v6  ;;  %v849_v19 = vadd.f32 %v812_v14, %v811_v13  ;;  %v806_v24 = vmul.f32 %v653_v7, %v653_v7  ;;  %281 = vst.msk [vmem:[%s1320_s27 + $0x48] sm:$0xff] %vm271_vm3, %v1175_v58  ;;  %v686_v13 = vld [vmem:[%s1320_s27] sm:$0xff] }
 0x184   : > { %282 = vst.msk [vmem:[%s1320_s27 + $0x50] sm:$0xff] %vm271_vm3, %v1175_v58 }
 0x185   : > { %835 = vadd.xlane.f32.xlu0 %v834_v9  ;;  %712 = vadd.xlane.f32.xlu2 %v711_v8  ;;  %v840_v20 = vadd.f32 %v806_v24, %v805_v22  ;;  %283 = vst.msk [vmem:[%s1320_s27 + $0x58] sm:$0xff] %vm271_vm3, %v1175_v58 }
 0x186   : > { %847 = vadd.xlane.f32.xlu1 %v846_v10  ;;  %284 = vst.msk [vmem:[%s1320_s27 + $0x60] sm:$0xff] %vm271_vm3, %v1175_v58 }
 0x187   : > { %v614_v15 = vpop.f32.mrf.mxu2  ;;  %285 = vst.msk [vmem:[%s1320_s27 + $0x68] sm:$0xff] %vm271_vm3, %v1175_v58 }
 0x188   : > { %v663_v16 = vpop.f32.mrf.mxu3  ;;  %v813_v25 = vmul.f32 %v614_v15, %v614_v15  ;;  %286 = vst.msk [vmem:[%s1320_s27 + $0x70] sm:$0xff] %vm271_vm3, %v1175_v58 }
 0x189   : > { %v814_v26 = vmul.f32 %v663_v16, %v663_v16  ;;  %v723_v33 = vadd.f32 %v663_v16, %v614_v15  ;;  %287 = vst.msk [vmem:[%s1320_s27 + $0x78] sm:$0xff] %vm271_vm3, %v1175_v58 }
 0x18a   : > { %288 = vst.msk [vmem:[%s1353_s30] sm:$0xff] %vm271_vm3, %v1175_v58 }
 0x18b   : > { %v852_v28 = vadd.f32 %v814_v26, %v813_v25  ;;  %289 = vst.msk [vmem:[%s1353_s30 + $0x8] sm:$0xff] %vm271_vm3, %v1175_v58  ;;  %v690_v25 = vld [vmem:[%s1320_s27 + $0x20] sm:$0xff] }
 0x18c   : > { %290 = vst.msk [vmem:[%s1353_s30 + $0x10] sm:$0xff] %vm271_vm3, %v1175_v58 }
 0x18d   : > { %718 = vadd.xlane.f32.xlu0 %v717_v18  ;;  %850 = vadd.xlane.f32.xlu2 %v849_v19  ;;  %291 = vst.msk [vmem:[%s1353_s30 + $0x18] sm:$0xff] %vm271_vm3, %v1175_v58 }
 0x18e   : > { %838 = vadd.xlane.f32.xlu1 %v837_v17  ;;  %292 = vst.msk [vmem:[%s1353_s30 + $0x20] sm:$0xff] %vm271_vm3, %v1175_v58  ;;  %v687_v17 = vld [vmem:[%s1320_s27 + $0x8] sm:$0xff] }
 0x18f   : > { %v617_v27 = vpop.f32.mrf.mxu2  ;;  %293 = vst.msk [vmem:[%s1353_s30 + $0x28] sm:$0xff] %vm271_vm3, %v1175_v58 }
 0x190   : > { %v666_v23 = vpop.f32.mrf.mxu3  ;;  %v815_v30 = vmul.f32 %v617_v27, %v617_v27  ;;  %294 = vst.msk [vmem:[%s1353_s30 + $0x30] sm:$0xff] %vm271_vm3, %v1175_v58 }
 0x191   : > { %v816_v31 = vmul.f32 %v666_v23, %v666_v23  ;;  %v726_v34 = vadd.f32 %v666_v23, %v617_v27  ;;  %295 = vst.msk [vmem:[%s1353_s30 + $0x38] sm:$0xff] %vm271_vm3, %v1175_v58  ;;  %v783_v16 = vld [vmem:[%s1353_s30] sm:$0xff]  ;;  %v688_v27 = vld [vmem:[%s1320_s27 + $0x10] sm:$0xff] }
 0x192   : > { %296 = vst.msk [vmem:[%s1353_s30 + $0x40] sm:$0xff] %vm271_vm3, %v1175_v58 }
 0x193   : > { %v855_v35 = vadd.f32 %v816_v31, %v815_v30  ;;  %297 = vst.msk [vmem:[%s1353_s30 + $0x48] sm:$0xff] %vm271_vm3, %v1175_v58  ;;  %v784_v31 = vld [vmem:[%s1353_s30 + $0x8] sm:$0xff] }
 0x194   : > { %298 = vst.msk [vmem:[%s1353_s30 + $0x50] sm:$0xff] %vm271_vm3, %v1175_v58 }
 0x195   : > { %841 = vadd.xlane.f32.xlu2 %v840_v20  ;;  %853 = vadd.xlane.f32.xlu0 %v852_v28  ;;  %299 = vst.msk [vmem:[%s1353_s30 + $0x58] sm:$0xff] %vm271_vm3, %v1175_v58  ;;  %v787_v26 = vld [vmem:[%s1353_s30 + $0x20] sm:$0xff] }
 0x196   : > { %721 = vadd.xlane.f32.xlu1 %v720_v29  ;;  %300 = vst.msk [vmem:[%s1353_s30 + $0x60] sm:$0xff] %vm271_vm3, %v1175_v58 }
 0x197   : > { %v619_v21 = vpop.f32.mrf.mxu2  ;;  %301 = vst.msk [vmem:[%s1353_s30 + $0x68] sm:$0xff] %vm271_vm3, %v1175_v58 }
 0x198   : > { %v668_v32 = vpop.f32.mrf.mxu3  ;;  %v817_v36 = vmul.f32 %v619_v21, %v619_v21  ;;  %302 = vst.msk [vmem:[%s1353_s30 + $0x70] sm:$0xff] %vm271_vm3, %v1175_v58 }
 0x199   : > { %v818_v37 = vmul.f32 %v668_v32, %v668_v32  ;;  %v729_v44 = vadd.f32 %v668_v32, %v619_v21  ;;  %303 = vst.msk [vmem:[%s1353_s30 + $0x78] sm:$0xff] %vm271_vm3, %v1175_v58  ;;  %v689_v32 = vld [vmem:[%s1320_s27 + $0x18] sm:$0xff] }
 0x19a   : > { %v693_v58 = vld [vmem:[%s1320_s27 + $0x38] sm:$0xff] }
 0x19b   : > { %v858_v42 = vadd.f32 %v818_v37, %v817_v36 }
 0x19d   : > { %724 = vadd.xlane.f32.xlu2 %v723_v33  ;;  %727 = vadd.xlane.f32.xlu0 %v726_v34  ;;  %v788_v33 = vld [vmem:[%s1353_s30 + $0x28] sm:$0xff] }
 0x19e   : > { %856 = vadd.xlane.f32.xlu1 %v855_v35 }
 0x19f   : > { %v622_v38 = vpop.f32.mrf.mxu2 }
 0x1a0   : > { %v819_v39 = vmul.f32 %v622_v38, %v622_v38  ;;  %v671_v40 = vpop.f32.mrf.mxu3 }
 0x1a1   : > { %v820_v41 = vmul.f32 %v671_v40, %v671_v40  ;;  %v732_v50 = vadd.f32 %v671_v40, %v622_v38  ;;  %v691_v40 = vld [vmem:[%s1320_s27 + $0x28] sm:$0xff] }
 0x1a3   : > { %v861_v43 = vadd.f32 %v820_v41, %v819_v39  ;;  %v789_v41 = vld [vmem:[%s1353_s30 + $0x30] sm:$0xff] }
 0x1a5   : > { %859 = vadd.xlane.f32.xlu2 %v858_v42  ;;  %862 = vadd.xlane.f32.xlu0 %v861_v43  ;;  %v785_v42 = vld [vmem:[%s1353_s30 + $0x10] sm:$0xff] }
 0x1a6   : > { %730 = vadd.xlane.f32.xlu1 %v729_v44 }
 0x1a7   : > { %v624_v45 = vpop.f32.mrf.mxu2 }
 0x1a8   : > { %v821_v46 = vmul.f32 %v624_v45, %v624_v45  ;;  %v673_v47 = vpop.f32.mrf.mxu3 }
 0x1a9   : > { %v822_v48 = vmul.f32 %v673_v47, %v673_v47  ;;  %v735_v49 = vadd.f32 %v673_v47, %v624_v45 }
 0x1ab   : > { %v864_v51 = vadd.f32 %v822_v48, %v821_v46 }
 0x1ad   : > { %736 = vadd.xlane.f32.xlu0 %v735_v49  ;;  %733 = vadd.xlane.f32.xlu2 %v732_v50  ;;  %v786_v49 = vld [vmem:[%s1353_s30 + $0x18] sm:$0xff] }
 0x1ae   : > { %865 = vadd.xlane.f32.xlu1 %v864_v51  ;;  %v790_v50 = vld [vmem:[%s1353_s30 + $0x38] sm:$0xff]  ;;  %v692_v51 = vld [vmem:[%s1320_s27 + $0x30] sm:$0xff] }
 0x1af   : > { %v627_v52 = vpop.f32.mrf.mxu2 }
 0x1b0   : > { %v823_v53 = vmul.f32 %v627_v52, %v627_v52  ;;  %v676_v54 = vpop.f32.mrf.mxu3 }
 0x1b1   : > { %v824_v55 = vmul.f32 %v676_v54, %v676_v54  ;;  %v738_v57 = vadd.f32 %v676_v54, %v627_v52 }
 0x1b3   : > { %v867_v56 = vadd.f32 %v824_v55, %v823_v53 }
 0x1b5   : > { %868 = vadd.xlane.f32.xlu2 %v867_v56 }
 0x1b6   : > { %739 = vadd.xlane.f32.xlu1 %v738_v57 }
 0x1b7   : > { %v629_v59 = vpop.f32.mrf.mxu2 }
 0x1b8   : > { %v678_v60 = vpop.f32.mrf.mxu3  ;;  %v825_v1 = vmul.f32 %v629_v59, %v629_v59 }
 0x1b9   : > { %v741_v61 = vadd.f32 %v678_v60, %v629_v59  ;;  %v826_v2 = vmul.f32 %v678_v60, %v678_v60  ;;  %v694_v59 = vld [vmem:[%s1320_s27 + $0x40] sm:$0xff] }
 0x1ba   : > { %v791_v60 = vld [vmem:[%s1353_s30 + $0x40] sm:$0xff] }
 0x1bb   : > { %v870_v6 = vadd.f32 %v826_v2, %v825_v1 }
 0x1bd   : > { %742 = vadd.xlane.f32.xlu2 %v741_v61 }
 0x1bf   : > { %v632_v62 = vpop.f32.mrf.mxu2 }
 0x1c0   : > { %v681_v63 = vpop.f32.mrf.mxu3  ;;  %v827_v10 = vmul.f32 %v632_v62, %v632_v62 }
 0x1c1   : > { %v744_v0 = vadd.f32 %v681_v63, %v632_v62  ;;  %v828_v11 = vmul.f32 %v681_v63, %v681_v63 }
 0x1c3   : > { %745 = vadd.xlane.f32.xlu0 %v744_v0  ;;  %v873_v12 = vadd.f32 %v828_v11, %v827_v10 }
 0x1c7   : > { %v634_v3 = vpop.f32.mrf.mxu2 }
 0x1c8   : > { %v829_v4 = vmul.f32 %v634_v3, %v634_v3  ;;  %v683_v5 = vpop.f32.mrf.mxu3 }
 0x1c9   : > { %v747_v7 = vadd.f32 %v683_v5, %v634_v3  ;;  %v830_v8 = vmul.f32 %v683_v5, %v683_v5  ;;  %v792_v3 = vld [vmem:[%s1353_s30 + $0x48] sm:$0xff] }
 0x1ca   : > { %v695_v5 = vld [vmem:[%s1320_s27 + $0x48] sm:$0xff] }
 0x1cb   : > { %871 = vadd.xlane.f32.xlu0 %v870_v6  ;;  %748 = vadd.xlane.f32.xlu1 %v747_v7  ;;  %v876_v9 = vadd.f32 %v830_v8, %v829_v4  ;;  %v793_v4 = vld [vmem:[%s1353_s30 + $0x50] sm:$0xff] }
 0x1cd   : > { %877 = vadd.xlane.f32.xlu2 %v876_v9 }
 0x1d3   : > { %874 = vadd.xlane.f32.xlu1 %v873_v12  ;;  %v697_v12 = vld [vmem:[%s1320_s27 + $0x58] sm:$0xff] }
 0x1e0   : > { %v704_v14 = vpop.xlane.xlu2 %703 }
 0x1e1   : > { %v750_v15 = vadd.f32 %v704_v14, %v686_v13  ;;  %v696_v13 = vld [vmem:[%s1320_s27 + $0x50] sm:$0xff]  ;;  %v794_v14 = vld [vmem:[%s1353_s30 + $0x58] sm:$0xff] }
 0x1e3   : > { %767 = vst.msk [vmem:[%s1320_s27] sm:$0xff] %vm271_vm3, %v750_v15 }
 0x1e8   : > { %v833_v18 = vpop.xlane.xlu2 %832  ;;  %v707_v19 = vpop.xlane.xlu0 %706 }
 0x1e9   : > { %v879_v22 = vadd.f32 %v833_v18, %v783_v16  ;;  %v751_v24 = vadd.f32 %v707_v19, %v687_v17 }
 0x1eb   : > { %895 = vst.msk [vmem:[%s1353_s30] sm:$0xff] %vm271_vm3, %v879_v22 }
 0x1ec   : > { %768 = vst.msk [vmem:[%s1320_s27 + $0x8] sm:$0xff] %vm271_vm3, %v751_v24  ;;  %v795_v24 = vld [vmem:[%s1353_s30 + $0x60] sm:$0xff] }
 0x1f0   : > { %v716_v23 = vpop.xlane.xlu2 %715  ;;  %v845_v20 = vpop.xlane.xlu0 %844 }
 0x1f1   : > { %v754_v28 = vadd.f32 %v716_v23, %v690_v25  ;;  %v883_v29 = vadd.f32 %v845_v20, %v787_v26  ;;  %v710_v21 = vpop.xlane.xlu1 %709  ;;  %v698_v25 = vld [vmem:[%s1320_s27 + $0x60] sm:$0xff] }
 0x1f2   : > { %v752_v30 = vadd.f32 %v710_v21, %v688_v27 }
 0x1f3   : > { %771 = vst.msk [vmem:[%s1320_s27 + $0x20] sm:$0xff] %vm271_vm3, %v754_v28  ;;  %v699_v28 = vld [vmem:[%s1320_s27 + $0x68] sm:$0xff] }
 0x1f4   : > { %899 = vst.msk [vmem:[%s1353_s30 + $0x20] sm:$0xff] %vm271_vm3, %v883_v29 }
 0x1f5   : > { %769 = vst.msk [vmem:[%s1320_s27 + $0x10] sm:$0xff] %vm271_vm3, %v752_v30  ;;  %v700_v30 = vld [vmem:[%s1320_s27 + $0x70] sm:$0xff] }
 0x1f8   : > { %v836_v34 = vpop.xlane.xlu0 %835  ;;  %v713_v35 = vpop.xlane.xlu2 %712 }
 0x1f9   : > { %v880_v36 = vadd.f32 %v836_v34, %v784_v31  ;;  %v753_v37 = vadd.f32 %v713_v35, %v689_v32  ;;  %v848_v38 = vpop.xlane.xlu1 %847  ;;  %v701_v34 = vld [vmem:[%s1320_s27 + $0x78] sm:$0xff] }
 0x1fa   : > { %v884_v39 = vadd.f32 %v848_v38, %v788_v33  ;;  %v796_v33 = vld [vmem:[%s1353_s30 + $0x68] sm:$0xff] }
 0x1fb   : > { %896 = vst.msk [vmem:[%s1353_s30 + $0x8] sm:$0xff] %vm271_vm3, %v880_v36 }
 0x1fc   : > { %770 = vst.msk [vmem:[%s1320_s27 + $0x18] sm:$0xff] %vm271_vm3, %v753_v37  ;;  %v798_v37 = vld [vmem:[%s1353_s30 + $0x78] sm:$0xff] }
 0x1fd   : > { %900 = vst.msk [vmem:[%s1353_s30 + $0x28] sm:$0xff] %vm271_vm3, %v884_v39 }
 0x200   : > { %v719_v43 = vpop.xlane.xlu0 %718  ;;  %v851_v44 = vpop.xlane.xlu2 %850 }
 0x201   : > { %v755_v45 = vadd.f32 %v719_v43, %v691_v40  ;;  %v885_v46 = vadd.f32 %v851_v44, %v789_v41  ;;  %v839_v47 = vpop.xlane.xlu1 %838 }
 0x202   : > { %v881_v48 = vadd.f32 %v839_v47, %v785_v42  ;;  %v797_v42 = vld [vmem:[%s1353_s30 + $0x70] sm:$0xff] }
 0x203   : > { %772 = vst.msk [vmem:[%s1320_s27 + $0x28] sm:$0xff] %vm271_vm3, %v755_v45 }
 0x204   : > { %901 = vst.msk [vmem:[%s1353_s30 + $0x30] sm:$0xff] %vm271_vm3, %v885_v46 }
 0x205   : > { %897 = vst.msk [vmem:[%s1353_s30 + $0x10] sm:$0xff] %vm271_vm3, %v881_v48 }
 0x208   : > { %v842_v52 = vpop.xlane.xlu2 %841  ;;  %v854_v53 = vpop.xlane.xlu0 %853 }
 0x209   : > { %v882_v54 = vadd.f32 %v842_v52, %v786_v49  ;;  %v722_v55 = vpop.xlane.xlu1 %721  ;;  %v886_v56 = vadd.f32 %v854_v53, %v790_v50 }
 0x20a   : > { %v756_v57 = vadd.f32 %v722_v55, %v692_v51 }
 0x20b   : > { %898 = vst.msk [vmem:[%s1353_s30 + $0x18] sm:$0xff] %vm271_vm3, %v882_v54 }
 0x20c   : > { %773 = vst.msk [vmem:[%s1320_s27 + $0x30] sm:$0xff] %vm271_vm3, %v756_v57 }
 0x20d   : > { %902 = vst.msk [vmem:[%s1353_s30 + $0x38] sm:$0xff] %vm271_vm3, %v886_v56 }
 0x210   : > { %v725_v61 = vpop.xlane.xlu2 %724  ;;  %v728_v62 = vpop.xlane.xlu0 %727 }
 0x211   : > { %v757_v63 = vadd.f32 %v725_v61, %v693_v58  ;;  %v857_v0 = vpop.xlane.xlu1 %856  ;;  %v758_v1 = vadd.f32 %v728_v62, %v694_v59 }
 0x212   : > { %v887_v2 = vadd.f32 %v857_v0, %v791_v60 }
 0x213   : > { %774 = vst.msk [vmem:[%s1320_s27 + $0x38] sm:$0xff] %vm271_vm3, %v757_v63 }
 0x214   : > { %903 = vst.msk [vmem:[%s1353_s30 + $0x40] sm:$0xff] %vm271_vm3, %v887_v2 }
 0x215   : > { %775 = vst.msk [vmem:[%s1320_s27 + $0x40] sm:$0xff] %vm271_vm3, %v758_v1 }
 0x218   : > { %v860_v6 = vpop.xlane.xlu2 %859  ;;  %v863_v7 = vpop.xlane.xlu0 %862 }
 0x219   : > { %v731_v8 = vpop.xlane.xlu1 %730  ;;  %v888_v9 = vadd.f32 %v860_v6, %v792_v3  ;;  %v889_v10 = vadd.f32 %v863_v7, %v793_v4 }
 0x21a   : > { %v759_v11 = vadd.f32 %v731_v8, %v695_v5 }
 0x21b   : > { %904 = vst.msk [vmem:[%s1353_s30 + $0x48] sm:$0xff] %vm271_vm3, %v888_v9 }
 0x21c   : > { %776 = vst.msk [vmem:[%s1320_s27 + $0x48] sm:$0xff] %vm271_vm3, %v759_v11 }
 0x21d   : > { %905 = vst.msk [vmem:[%s1353_s30 + $0x50] sm:$0xff] %vm271_vm3, %v889_v10 }
 0x220   : > { %v737_v15 = vpop.xlane.xlu0 %736  ;;  %v734_v16 = vpop.xlane.xlu2 %733 }
 0x221   : > { %v761_v17 = vadd.f32 %v737_v15, %v697_v12  ;;  %v760_v18 = vadd.f32 %v734_v16, %v696_v13  ;;  %v866_v19 = vpop.xlane.xlu1 %865 }
 0x222   : > { %v890_v22 = vadd.f32 %v866_v19, %v794_v14 }
 0x223   : > { %778 = vst.msk [vmem:[%s1320_s27 + $0x58] sm:$0xff] %vm271_vm3, %v761_v17 }
 0x224   : > { %777 = vst.msk [vmem:[%s1320_s27 + $0x50] sm:$0xff] %vm271_vm3, %v760_v18 }
 0x225   : > { %906 = vst.msk [vmem:[%s1353_s30 + $0x58] sm:$0xff] %vm271_vm3, %v890_v22 }
 0x228   : > { %v869_v26 = vpop.xlane.xlu2 %868 }
 0x229   : > { %v891_v27 = vadd.f32 %v869_v26, %v795_v24  ;;  %v740_v23 = vpop.xlane.xlu1 %739 }
 0x22a   : > { %v762_v20 = vadd.f32 %v740_v23, %v698_v25 }
 0x22b   : > { %907 = vst.msk [vmem:[%s1353_s30 + $0x60] sm:$0xff] %vm271_vm3, %v891_v27 }
 0x22c   : > { %779 = vst.msk [vmem:[%s1320_s27 + $0x60] sm:$0xff] %vm271_vm3, %v762_v20 }
 0x230   : > { %v743_v29 = vpop.xlane.xlu2 %742 }
 0x231   : > { %v763_v21 = vadd.f32 %v743_v29, %v699_v28 }
 0x233   : > { %780 = vst.msk [vmem:[%s1320_s27 + $0x68] sm:$0xff] %vm271_vm3, %v763_v21 }
 0x236   : > { %v746_v31 = vpop.xlane.xlu0 %745 }
 0x237   : > { %v764_v32 = vadd.f32 %v746_v31, %v700_v30 }
 0x239   : > { %781 = vst.msk [vmem:[%s1320_s27 + $0x70] sm:$0xff] %vm271_vm3, %v764_v32 }
 0x23e   : > { %v872_v35 = vpop.xlane.xlu0 %871  ;;  %v749_v36 = vpop.xlane.xlu1 %748 }
 0x23f   : > { %v892_v38 = vadd.f32 %v872_v35, %v796_v33  ;;  %v765_v39 = vadd.f32 %v749_v36, %v701_v34 }
 0x240   : > { %v878_v40 = vpop.xlane.xlu2 %877 }
 0x241   : > { %908 = vst.msk [vmem:[%s1353_s30 + $0x68] sm:$0xff] %vm271_vm3, %v892_v38  ;;  %v894_v41 = vadd.f32 %v878_v40, %v798_v37 }
 0x242   : > { %782 = vst.msk [vmem:[%s1320_s27 + $0x78] sm:$0xff] %vm271_vm3, %v765_v39 }
 0x243   : > { %910 = vst.msk [vmem:[%s1353_s30 + $0x78] sm:$0xff] %vm271_vm3, %v894_v41 }
 0x246   : > { %v875_v43 = vpop.xlane.xlu1 %874 }
 0x247   : > { %v893_v44 = vadd.f32 %v875_v43, %v797_v42 }
 0x249   : > { %909 = vst.msk [vmem:[%s1353_s30 + $0x70] sm:$0xff] %vm271_vm3, %v893_v44 }
 0x24a PF: > { %s16_s20 = sadd.s32 1, %s1172_s20   ;;  %s1504_s18 = smov %s1168_s19 }
 0x24b   : > { %p13_p5 = scmp.ge.s32.totalorder %s16_s20, 4   ;;  %s1505_s19 = smov %s1507_s21 }
 0x24d   :  { %15 = sbr.rel (!%p13_p5) target bundleno = 2 (0x2), region = 82 }

</bundles_post_ra>
